<compile_context>
chip_gen: v6e
topology: v6e:2x2x1
jax: 0.10.0
libtpu: 0.0.40
codegen_flags: <defaults>
</compile_context>

<pallas_src>
import functools

import jax
import jax.numpy as jnp
from jax.experimental import pallas as pl
from jax.experimental.pallas import tpu as pltpu


def _round_up(n, m):
    return -(-n // m) * m


# ----------------------------------------------------------------------------
# Kernel
# ----------------------------------------------------------------------------
def _attention_kernel(enc2d_ref, dec_ref,
                      w_enc_ref, b_enc_ref,
                      w_dec_ref, b_dec_ref,
                      w_v_ref,
                      ctx_ref, alpha_ref,
                      *, bt, hw, hw_p):
    E = enc2d_ref.shape[1]
    A = w_enc_ref.shape[1]

    enc2d = enc2d_ref[...]                                   # (Bt*HWp, E)
    dec = dec_ref[...]                                       # (Bt, D)

    # attn1 = enc_out @ W_enc^T + b_enc as a single (Bt*HWp, E)@(E, A) MXU matmul.
    attn1 = jnp.dot(enc2d, w_enc_ref[...],
                    preferred_element_type=jnp.float32) + b_enc_ref[...]
    # attn2 = dec_h @ W_dec^T + b_dec, one row per batch element.
    attn2 = jnp.dot(dec, w_dec_ref[...],
                    preferred_element_type=jnp.float32) + b_dec_ref[...]

    # HWp % 8 == 0 (wrapper pads), so splitting the sublane axis is a free
    # relayout — no VMEM copy.
    attn1 = attn1.reshape(bt, hw_p, A)
    score = jnp.maximum(attn1 + attn2[:, None, :], 0.0)      # ReLU, (Bt, HWp, A)

    # V-projection as VPU multiply + lane reduce (avoids an N=1 MXU matmul).
    # b_v is intentionally dropped: a uniform logit shift is softmax-invariant.
    logits = jnp.sum(score * w_v_ref[...], axis=-1)          # (Bt, HWp)

    if hw_p != hw:
        # Mask zero-padded spatial positions out of the softmax.
        pos = jax.lax.broadcasted_iota(jnp.int32, (bt, hw_p), 1)
        logits = jnp.where(pos < hw, logits, -1e30)

    # Per-batch-row softmax over the spatial axis (PyTorch dim=1 after squeeze(2)).
    m = jnp.max(logits, axis=-1, keepdims=True)              # (Bt, 1)
    p = jnp.exp(logits - m)                                   # (Bt, HWp)
    denom = jnp.sum(p, axis=-1, keepdims=True)                # (Bt, 1)
    alpha = p / denom                                         # exact normalization

    # context_vec = sum_hw alpha * enc_out (VPU multiply + sublane reduce
    # instead of an M=1 MXU matmul with transposes).
    enc3d = enc2d.reshape(bt, hw_p, E)                        # free relayout
    ctx = jnp.sum(alpha[:, :, None] * enc3d, axis=1)          # (Bt, E)

    ctx_ref[...] = ctx.astype(ctx_ref.dtype)
    alpha_ref[...] = alpha.astype(alpha_ref.dtype)


# ----------------------------------------------------------------------------
# Generation-aware block-size selection
# ----------------------------------------------------------------------------
def _tpu_generation_info():
    """(vmem_capacity_bytes, has_two_tensorcores), with safe fallbacks."""
    vmem_bytes = 128 << 20
    two_tc = False
    try:
        vmem_bytes = int(pltpu.get_tpu_info().vmem_capacity_bytes)
    except Exception:
        pass
    try:
        kind = jax.devices()[0].device_kind.lower()
        two_tc = ("v7" in kind) or ("7x" in kind)
    except Exception:
        pass
    if vmem_bytes <= (64 << 20):      # v7x-class part: 64 MiB VMEM, 2 TCs / chip
        two_tc = True
    return vmem_bytes, two_tc


def _block_vmem_bytes(bt, hw_p, E, D, A, itemsize):
    """Conservative per-step VMEM estimate for a batch block of size bt."""
    r8 = lambda n: _round_up(n, 8)
    r128 = lambda n: _round_up(n, 128)
    f32 = 4
    # Double-buffered streamed blocks (enc rows, dec rows, both outputs).
    enc_blk = bt * hw_p * r128(E) * itemsize
    dec_blk = r8(bt) * r128(D) * itemsize
    ctx_blk = r8(bt) * r128(E) * itemsize
    alpha_blk = r8(bt) * r128(hw_p) * itemsize
    streamed = 2 * (enc_blk + dec_blk + ctx_blk + alpha_blk)
    # Resident weights (count double-buffered to stay conservative).
    weights = 2 * (r8(E) * r128(A) + r8(D) * r128(A) + 3 * 8 * r128(A)) * f32
    # Live f32 intermediates: attn1/score/p (score-sized, up to ~3 live at once)
    # plus the alpha*enc broadcast product (enc-sized).
    temps = 3 * bt * hw_p * r128(A) * f32 + bt * hw_p * r128(E) * f32
    return streamed + weights + temps


def _pick_block_batch(B, hw_p, E, D, A, itemsize, vmem_budget_bytes, two_tc):
    # Only sublane-aligned blocks (Bt % 8 == 0) or the full batch are legal
    # block shapes for the (B, *) arrays.
    cands = [d for d in range(1, B + 1)
             if B % d == 0 and (d % 8 == 0 or d == B)]
    fitting = [d for d in cands
               if _block_vmem_bytes(d, hw_p, E, D, A, itemsize) <= vmem_budget_bytes]
    if not fitting:
        return min(cands)            # smallest legal block; rely on vmem_limit headroom
    if not two_tc:
        return max(fitting)          # single TC (v5e/v6e): biggest tile wins
    # 2-TC chip (v7x): keep >= 2 grid steps for megacore sharding, unless that
    # would starve the MXU (target M = Bt*HWp >= 512 rows).
    multi = [d for d in fitting if B // d >= 2]
    if multi:
        best = max(multi)
        if best * hw_p >= 512 or max(fitting) * hw_p < 512:
            return best
    return max(fitting)


# ----------------------------------------------------------------------------
# Wrapper
# ----------------------------------------------------------------------------
def attention_pallas(enc_out, dec_h, params):
    """enc_out: (B, HW, E), dec_h: (B, D) -> (context_vec (B, E), alpha (B, HW))."""
    B, HW, E = enc_out.shape
    D = dec_h.shape[1]
    A = params["w_enc_t"].shape[1]
    itemsize = jnp.dtype(enc_out.dtype).itemsize

    # Pad the spatial axis to a sublane multiple so every in-kernel reshape is a
    # free relayout; flatten to 2-D in HBM (free) for the projection matmul.
    HWp = _round_up(HW, 8)
    if HWp != HW:
        enc_p = jnp.pad(enc_out, ((0, 0), (0, HWp - HW), (0, 0)))
    else:
        enc_p = enc_out
    enc2d = enc_p.reshape(B * HWp, E)

    vmem_bytes, two_tc = _tpu_generation_info()
    vmem_budget = max(8 << 20, min(32 << 20, vmem_bytes // 5))
    vmem_limit = max(32 << 20, min((vmem_bytes * 3) // 4, vmem_bytes - (8 << 20)))

    Bt = _pick_block_batch(B, HWp, E, D, A, itemsize, vmem_budget, two_tc)
    assert B % Bt == 0
    grid = (B // Bt,)

    w_enc_t = params["w_enc_t"]                  # (E, A)
    b_enc = params["b_enc"].reshape(1, A)
    w_dec_t = params["w_dec_t"]                  # (D, A)
    b_dec = params["b_dec"].reshape(1, A)
    w_v_row = params["w_v_t"].reshape(1, A)      # (A, 1) -> (1, A) row for the VPU path
    # b_v is not passed to the kernel (softmax-invariant; see kernel comment).

    kernel = functools.partial(_attention_kernel, bt=Bt, hw=HW, hw_p=HWp)

    grid_spec = pltpu.PrefetchScalarGridSpec(
        num_scalar_prefetch=0,
        grid=grid,
        in_specs=[
            pl.BlockSpec((Bt * HWp, E), lambda b: (b, 0)),   # enc rows (streamed)
            pl.BlockSpec((Bt, D), lambda b: (b, 0)),         # dec_h block
            pl.BlockSpec((E, A), lambda b: (0, 0)),          # W_enc^T (resident)
            pl.BlockSpec((1, A), lambda b: (0, 0)),          # b_enc
            pl.BlockSpec((D, A), lambda b: (0, 0)),          # W_dec^T
            pl.BlockSpec((1, A), lambda b: (0, 0)),          # b_dec
            pl.BlockSpec((1, A), lambda b: (0, 0)),          # W_v row
        ],
        out_specs=[
            pl.BlockSpec((Bt, E), lambda b: (b, 0)),         # context_vec
            pl.BlockSpec((Bt, HWp), lambda b: (b, 0)),       # alpha (padded columns = 0)
        ],
    )

    ctx, alpha_p = pl.pallas_call(
        kernel,
        out_shape=(
            jax.ShapeDtypeStruct((B, E), enc_out.dtype),
            jax.ShapeDtypeStruct((B, HWp), enc_out.dtype),
        ),
        grid_spec=grid_spec,
        compiler_params=pltpu.CompilerParams(
            dimension_semantics=("parallel",),
            vmem_limit_bytes=int(vmem_limit),
        ),
    )(enc2d, dec_h, w_enc_t, b_enc, w_dec_t, b_dec, w_v_row)

    return ctx, alpha_p[:, :HW]


# ----------------------------------------------------------------------------
# Plain-JAX reference (matches the PyTorch forward, including b_v)
# ----------------------------------------------------------------------------
def attention_ref(enc_out, dec_h, params):
    attn1 = enc_out @ params["w_enc_t"] + params["b_enc"]        # (B, HW, A)
    attn2 = dec_h @ params["w_dec_t"] + params["b_dec"]          # (B, A)
    score = jax.nn.relu(attn1 + attn2[:, None, :])               # (B, HW, A)
    logits = (score @ params["w_v_t"])[..., 0] + params["b_v"]   # (B, HW)
    alpha = jax.nn.softmax(logits, axis=1)                       # (B, HW)
    ctx = jnp.sum(alpha[:, :, None] * enc_out, axis=1)           # (B, E)
    return ctx, alpha


def init_params(key, attn_size, dec_h_size, enc_size):
    ks = jax.random.split(key, 6)
    scale = 0.1
    return {
        # stored pre-transposed as (in, out)
        "w_enc_t": scale * jax.random.normal(ks[0], (enc_size, attn_size), jnp.float32),
        "b_enc": scale * jax.random.normal(ks[1], (attn_size,), jnp.float32),
        "w_dec_t": scale * jax.random.normal(ks[2], (dec_h_size, attn_size), jnp.float32),
        "b_dec": scale * jax.random.normal(ks[3], (attn_size,), jnp.float32),
        "w_v_t": scale * jax.random.normal(ks[4], (attn_size, 1), jnp.float32),
        "b_v": scale * jax.random.normal(ks[5], (1,), jnp.float32),
    }


def _run_case(key, B, HW, E, D, A):
    k_enc, k_dec, k_par = jax.random.split(key, 3)
    enc_out = jax.random.normal(k_enc, (B, HW, E), jnp.float32)
    dec_h = jax.random.normal(k_dec, (B, D), jnp.float32)
    params = init_params(k_par, A, D, E)

    ctx, alpha = attention_pallas(enc_out, dec_h, params)
    jax.block_until_ready((ctx, alpha))

    ctx_r, alpha_r = attention_ref(enc_out, dec_h, params)
    assert ctx.shape == (B, E) and alpha.shape == (B, HW)
    assert jnp.allclose(ctx, ctx_r, atol=1e-4, rtol=1e-4), "context mismatch"
    assert jnp.allclose(alpha, alpha_r, atol=1e-4, rtol=1e-4), "alpha mismatch"
    assert jnp.allclose(jnp.sum(alpha, axis=1), 1.0, atol=1e-4), "softmax not normalized"


if __name__ == "__main__":
    key = jax.random.PRNGKey(0)
    k0, k1 = jax.random.split(key)

    # Aligned spatial axis (HW % 8 == 0): batch=16, hw=16, enc=32, dec_h=32, attn=32.
    _run_case(k0, B=16, HW=16, E=32, D=32, A=32)
    # Unaligned spatial axis (exercises the HW padding + softmax masking path).
    _run_case(k1, B=4, HW=12, E=32, D=24, A=48)

    print("KERNEL_OK")
</pallas_src>

<mosaic_0001>
module attributes {stable_mosaic.version = 11 : i64} {
  func.func @_attention_kernel(%arg0: i32, %arg1: memref<256x32xf32, #tpu.memory_space<vmem>>, %arg2: memref<16x32xf32, #tpu.memory_space<vmem>>, %arg3: memref<32x32xf32, #tpu.memory_space<vmem>>, %arg4: memref<1x32xf32, #tpu.memory_space<vmem>>, %arg5: memref<32x32xf32, #tpu.memory_space<vmem>>, %arg6: memref<1x32xf32, #tpu.memory_space<vmem>>, %arg7: memref<1x32xf32, #tpu.memory_space<vmem>>, %arg8: memref<16x32xf32, #tpu.memory_space<vmem>>, %arg9: memref<16x16xf32, #tpu.memory_space<vmem>>) attributes {dimension_semantics = [#tpu.dimension_semantics<parallel>], iteration_bounds = array<i64: 1>, scalar_prefetch = 0 : i64, scratch_operands = 0 : i64, tpu.core_type = #tpu.core_type<tc>, window_params = [{transform_indices = @transform_0, window_bounds = array<i64: 256, 32>}, {transform_indices = @transform_1, window_bounds = array<i64: 16, 32>}, {pipeline_mode = #tpu.pipeline_mode<synchronous>, transform_indices = @transform_2, window_bounds = array<i64: 32, 32>}, {pipeline_mode = #tpu.pipeline_mode<synchronous>, transform_indices = @transform_3, window_bounds = array<i64: 1, 32>}, {pipeline_mode = #tpu.pipeline_mode<synchronous>, transform_indices = @transform_4, window_bounds = array<i64: 32, 32>}, {pipeline_mode = #tpu.pipeline_mode<synchronous>, transform_indices = @transform_5, window_bounds = array<i64: 1, 32>}, {pipeline_mode = #tpu.pipeline_mode<synchronous>, transform_indices = @transform_6, window_bounds = array<i64: 1, 32>}, {transform_indices = @transform_7, window_bounds = array<i64: 16, 32>}, {transform_indices = @transform_8, window_bounds = array<i64: 16, 16>}]} {
    %c0 = arith.constant 0 : index
    %c0_0 = arith.constant 0 : index
    %0 = vector.load %arg1[%c0, %c0_0] : memref<256x32xf32, #tpu.memory_space<vmem>>, vector<256x32xf32>
    %c0_1 = arith.constant 0 : index
    %c0_2 = arith.constant 0 : index
    %1 = vector.load %arg2[%c0_1, %c0_2] : memref<16x32xf32, #tpu.memory_space<vmem>>, vector<16x32xf32>
    %c0_3 = arith.constant 0 : index
    %c0_4 = arith.constant 0 : index
    %2 = vector.load %arg3[%c0_3, %c0_4] : memref<32x32xf32, #tpu.memory_space<vmem>>, vector<32x32xf32>
    %cst = arith.constant dense<0.000000e+00> : vector<256x32xf32>
    %3 = tpu.matmul %0, %2, %cst {dimension_numbers = #tpu.dot_dimension_numbers<[1], [0], [0], [1], [0, 0, 1, 1], [], []>} : vector<256x32xf32>, vector<32x32xf32>, vector<256x32xf32> -> vector<256x32xf32>
    %c0_5 = arith.constant 0 : index
    %c0_6 = arith.constant 0 : index
    %4 = vector.load %arg4[%c0_5, %c0_6] : memref<1x32xf32, #tpu.memory_space<vmem>>, vector<1x32xf32>
    %5 = vector.broadcast %4 : vector<1x32xf32> to vector<256x32xf32>
    %6 = arith.addf %3, %5 : vector<256x32xf32>
    %c0_7 = arith.constant 0 : index
    %c0_8 = arith.constant 0 : index
    %7 = vector.load %arg5[%c0_7, %c0_8] : memref<32x32xf32, #tpu.memory_space<vmem>>, vector<32x32xf32>
    %cst_9 = arith.constant dense<0.000000e+00> : vector<16x32xf32>
    %8 = tpu.matmul %1, %7, %cst_9 {dimension_numbers = #tpu.dot_dimension_numbers<[1], [0], [0], [1], [0, 0, 1, 1], [], []>} : vector<16x32xf32>, vector<32x32xf32>, vector<16x32xf32> -> vector<16x32xf32>
    %c0_10 = arith.constant 0 : index
    %c0_11 = arith.constant 0 : index
    %9 = vector.load %arg6[%c0_10, %c0_11] : memref<1x32xf32, #tpu.memory_space<vmem>>, vector<1x32xf32>
    %10 = vector.broadcast %9 : vector<1x32xf32> to vector<16x32xf32>
    %11 = arith.addf %8, %10 : vector<16x32xf32>
    %12 = vector.shape_cast %6 : vector<256x32xf32> to vector<16x16x32xf32>
    %13 = vector.shape_cast %11 : vector<16x32xf32> to vector<16x1x32xf32>
    %14 = vector.broadcast %13 : vector<16x1x32xf32> to vector<16x16x32xf32>
    %15 = arith.addf %12, %14 : vector<16x16x32xf32>
    %cst_12 = arith.constant 0.000000e+00 : f32
    %16 = vector.broadcast %cst_12 : f32 to vector<16x16x32xf32>
    %17 = arith.maximumf %15, %16 : vector<16x16x32xf32>
    %c0_13 = arith.constant 0 : index
    %c0_14 = arith.constant 0 : index
    %18 = vector.load %arg7[%c0_13, %c0_14] : memref<1x32xf32, #tpu.memory_space<vmem>>, vector<1x32xf32>
    %19 = vector.shape_cast %18 : vector<1x32xf32> to vector<1x1x32xf32>
    %20 = vector.broadcast %19 : vector<1x1x32xf32> to vector<16x16x32xf32>
    %21 = arith.mulf %17, %20 : vector<16x16x32xf32>
    %cst_15 = arith.constant dense<0.000000e+00> : vector<16x16xf32>
    %22 = vector.multi_reduction <add>, %21, %cst_15 [2] : vector<16x16x32xf32> to vector<16x16xf32>
    %cst_16 = arith.constant dense<0xFF800000> : vector<16xf32>
    %23 = vector.multi_reduction <maximumf>, %22, %cst_16 [1] : vector<16x16xf32> to vector<16xf32>
    %24 = vector.shape_cast %23 : vector<16xf32> to vector<16x1xf32>
    %25 = vector.broadcast %24 : vector<16x1xf32> to vector<16x16xf32>
    %26 = arith.subf %22, %25 : vector<16x16xf32>
    %27 = math.exp %26 : vector<16x16xf32>
    %cst_17 = arith.constant dense<0.000000e+00> : vector<16xf32>
    %28 = vector.multi_reduction <add>, %27, %cst_17 [1] : vector<16x16xf32> to vector<16xf32>
    %29 = vector.shape_cast %28 : vector<16xf32> to vector<16x1xf32>
    %30 = vector.broadcast %29 : vector<16x1xf32> to vector<16x16xf32>
    %31 = arith.divf %27, %30 : vector<16x16xf32>
    %32 = vector.shape_cast %0 : vector<256x32xf32> to vector<16x16x32xf32>
    %33 = vector.shape_cast %31 : vector<16x16xf32> to vector<16x16x1xf32>
    %34 = vector.broadcast %33 : vector<16x16x1xf32> to vector<16x16x32xf32>
    %35 = arith.mulf %34, %32 : vector<16x16x32xf32>
    %cst_18 = arith.constant dense<0.000000e+00> : vector<16x32xf32>
    %36 = vector.multi_reduction <add>, %35, %cst_18 [1] : vector<16x16x32xf32> to vector<16x32xf32>
    %c0_19 = arith.constant 0 : index
    %c0_20 = arith.constant 0 : index
    %37 = vector.load %arg8[%c0_19, %c0_20] : memref<16x32xf32, #tpu.memory_space<vmem>>, vector<16x32xf32>
    tpu.vector_store %arg8[%c0_19, %c0_20], %36 {strides = array<i32>} : memref<16x32xf32, #tpu.memory_space<vmem>>, vector<16x32xf32>,
    %c0_21 = arith.constant 0 : index
    %c0_22 = arith.constant 0 : index
    %38 = vector.load %arg9[%c0_21, %c0_22] : memref<16x16xf32, #tpu.memory_space<vmem>>, vector<16x16xf32>
    tpu.vector_store %arg9[%c0_21, %c0_22], %31 {strides = array<i32>} : memref<16x16xf32, #tpu.memory_space<vmem>>, vector<16x16xf32>,
    return
  }
  func.func @transform_0(%arg0: i32) -> (i32, i32) {
    %c0_i32 = arith.constant 0 : i32
    %c0_i32_0 = arith.constant 0 : i32
    return %arg0, %c0_i32 : i32, i32
  }
  func.func @transform_1(%arg0: i32) -> (i32, i32) {
    %c0_i32 = arith.constant 0 : i32
    %c0_i32_0 = arith.constant 0 : i32
    return %arg0, %c0_i32 : i32, i32
  }
  func.func @transform_2(%arg0: i32) -> (i32, i32) {
    %c0_i32 = arith.constant 0 : i32
    %c0_i32_0 = arith.constant 0 : i32
    %c0_i32_1 = arith.constant 0 : i32
    return %c0_i32, %c0_i32_0 : i32, i32
  }
  func.func @transform_3(%arg0: i32) -> (i32, i32) {
    %c0_i32 = arith.constant 0 : i32
    %c0_i32_0 = arith.constant 0 : i32
    %c0_i32_1 = arith.constant 0 : i32
    return %c0_i32, %c0_i32_0 : i32, i32
  }
  func.func @transform_4(%arg0: i32) -> (i32, i32) {
    %c0_i32 = arith.constant 0 : i32
    %c0_i32_0 = arith.constant 0 : i32
    %c0_i32_1 = arith.constant 0 : i32
    return %c0_i32, %c0_i32_0 : i32, i32
  }
  func.func @transform_5(%arg0: i32) -> (i32, i32) {
    %c0_i32 = arith.constant 0 : i32
    %c0_i32_0 = arith.constant 0 : i32
    %c0_i32_1 = arith.constant 0 : i32
    return %c0_i32, %c0_i32_0 : i32, i32
  }
  func.func @transform_6(%arg0: i32) -> (i32, i32) {
    %c0_i32 = arith.constant 0 : i32
    %c0_i32_0 = arith.constant 0 : i32
    %c0_i32_1 = arith.constant 0 : i32
    return %c0_i32, %c0_i32_0 : i32, i32
  }
  func.func @transform_7(%arg0: i32) -> (i32, i32) {
    %c0_i32 = arith.constant 0 : i32
    %c0_i32_0 = arith.constant 0 : i32
    return %arg0, %c0_i32 : i32, i32
  }
  func.func @transform_8(%arg0: i32) -> (i32, i32) {
    %c0_i32 = arith.constant 0 : i32
    %c0_i32_0 = arith.constant 0 : i32
    return %arg0, %c0_i32 : i32, i32
  }
}

</mosaic_0001>

<bundles_post_ra>
// kernel: tpu_custom_call.1
= control target key start
LH: loop header
LB: loop body
LE: loop exit
PB: predicated region body
PF: predicated region fallthrough
CT: control target
= control target key end

     0   :  { %14 = vsyncpa [#allocation3], 0  ;;  %vm75_vm0 = vcmask 261120   ;;  %s3864_s0 = inlined_call_operand.vmem [shape: f32[256,32], index: 0, kind: input, shape index: {}]   ;;  %s3865_s1 = inlined_call_operand.vmem [shape: f32[16,32], index: 1, kind: input, shape index: {}]   ;;  %s3866_s2 = inlined_call_operand.vmem [shape: f32[32,32], index: 2, kind: input, shape index: {}]   ;;  %s3867_s3 = inlined_call_operand.vmem [shape: f32[1,32], index: 3, kind: input, shape index: {}]   ;;  %s3868_s4 = inlined_call_operand.vmem [shape: f32[32,32], index: 4, kind: input, shape index: {}]   ;;  %s3869_s5 = inlined_call_operand.vmem [shape: f32[1,32], index: 5, kind: input, shape index: {}]   ;;  %s3870_s6 = inlined_call_operand.vmem [shape: f32[1,32], index: 6, kind: input, shape index: {}]   ;;  %s3871_s7 = inlined_call_operand.hbm [shape: f32[16,32], index: 7, kind: output, shape index: {0}]   ;;  %s3872_s8 = inlined_call_operand.hbm [shape: f32[16,16], index: 8, kind: output, shape index: {1}]  }
   0x1   :  { %v67_v0 = vld [vmem:[%s3866_s2 + $0x18] sm:$0xff]  ;;  %v66_v1 = vld [vmem:[%s3866_s2 + $0x10] sm:$0xff]  ;;  %v65_v2 = vld [vmem:[%s3866_s2 + $0x8] sm:$0xff] }
   0x2   :  { %2323 = vmatprep.subr.mxu0 %v67_v0  ;;  %2390 = vmatprep.subr.mxu1 %v67_v0  ;;  %v64_v3 = vld [vmem:[%s3866_s2] sm:$0xff]  ;;  %v48_v5 = vld [vmem:[%s3864_s0 + $0x90] sm:$0xff]  ;;  %v31_v6 = vld [vmem:[%s3864_s0 + $0x8] sm:$0xff] }
   0x3   :  { %2324 = vmatpush3.msra.mxu0 %v67_v0  ;;  %2394 = vmatpush3.msra.mxu1 %v67_v0  ;;  %v30_v4 = vld [vmem:[%s3864_s0] sm:$0xff]  ;;  %v49_v7 = vld [vmem:[%s3864_s0 + $0x98] sm:$0xff]  ;;  %v32_v9 = vld [vmem:[%s3864_s0 + $0x10] sm:$0xff] }
   0x4   :  { %2325 = vmatprep.subr.mxu0 %v66_v1  ;;  %2391 = vmatprep.subr.mxu1 %v66_v1  ;;  %v400_v8 = vld [vmem:[%s3868_s4 + $0x18] sm:$0xff]  ;;  %v50_v10 = vld [vmem:[%s3864_s0 + $0xa0] sm:$0xff]  ;;  %v399_v11 = vld [vmem:[%s3868_s4 + $0x10] sm:$0xff] }
   0x5   :  { %2326 = vmatpush3.msra.mxu0 %v66_v1  ;;  %2395 = vmatpush3.msra.mxu1 %v66_v1  ;;  %v33_v12 = vld [vmem:[%s3864_s0 + $0x18] sm:$0xff]  ;;  %v51_v13 = vld [vmem:[%s3864_s0 + $0xa8] sm:$0xff]  ;;  %v34_v14 = vld [vmem:[%s3864_s0 + $0x20] sm:$0xff] }
   0x6   :  { %2327 = vmatprep.subr.mxu0 %v65_v2  ;;  %2392 = vmatprep.subr.mxu1 %v65_v2  ;;  %v52_v15 = vld [vmem:[%s3864_s0 + $0xb0] sm:$0xff]  ;;  %v398_v16 = vld [vmem:[%s3868_s4 + $0x8] sm:$0xff] }
   0x7   :  { %2328 = vmatpush3.msra.mxu0 %v65_v2  ;;  %2396 = vmatpush3.msra.mxu1 %v65_v2 }
   0x8   :  { %2329 = vmatprep.subr.mxu0 %v64_v3  ;;  %2393 = vmatprep.subr.mxu1 %v64_v3 }
   0x9   :  { %2330 = vmatpush3.msra.mxu0 %v64_v3  ;;  %2397 = vmatpush3.msra.mxu1 %v64_v3 }
   0xa   :  { %2331 = vmatprep.mubr.msk.f32.mxu0 %vm75_vm0, %v30_v4  ;;  %2358 = vmatprep.mubr.msk.f32.mxu1 %vm75_vm0, %v48_v5 }
   0xb   :  { %2332 = vmatmul.mubr.msk.f32.vlgmr.msra.gmra.mxu0 %vm75_vm0, %v31_v6  ;;  %2359 = vmatmul.mubr.msk.f32.vlgmr.msra.gmra.mxu1 %vm75_vm0, %v49_v7 }
   0xc   :  { %2379 = vmatprep.subr.mxu1 %v400_v8  ;;  %2334 = vmatprep.mubr.msk.f32.mxu0 %vm75_vm0, %v32_v9 }
   0xd   :  { %2380 = vmatpush3.msra.mxu1 %v400_v8  ;;  %2361 = vmatprep.mubr.msk.f32.mxu1 %vm75_vm0, %v50_v10 }
   0xe   :  { %2381 = vmatprep.subr.mxu1 %v399_v11 }
   0xf   :  { %2335 = vmatmul.mubr.msk.f32.gmra.mxu0 %vm75_vm0, %v33_v12  ;;  %2362 = vmatmul.mubr.msk.f32.gmra.mxu1 %vm75_vm0, %v51_v13 }
  0x10   :  { %15 = vsyncpa [#allocation5], 0  ;;  %2337 = vmatprep.mubr.msk.f32.mxu0 %vm75_vm0, %v34_v14  ;;  %2364 = vmatprep.mubr.msk.f32.mxu1 %vm75_vm0, %v52_v15  ;;  %v35_v17 = vld [vmem:[%s3864_s0 + $0x28] sm:$0xff]  ;;  %v53_v18 = vld [vmem:[%s3864_s0 + $0xb8] sm:$0xff]  ;;  %v2578_v62 = vmov 1966171168   ;;  %v495_v0 = vlaneseq }
  0x11   :  { %2382 = vmatpush3.msra.mxu1 %v399_v11  ;;  %v36_v19 = vld [vmem:[%s3864_s0 + $0x30] sm:$0xff]  ;;  %v54_v20 = vld [vmem:[%s3864_s0 + $0xc0] sm:$0xff]  ;;  %v37_v22 = vld [vmem:[%s3864_s0 + $0x38] sm:$0xff]  ;;  %v493_v63 = vunpack.c.l.s4 %v2578_v62  ;;  %vm911_vm1 = vcmask 130112   ;;  %vm1048_vm2 = vcmask 1041409   ;;  %vm1050_vm3 = vcmask 1042434  }
  0x12   :  { %2383 = vmatprep.subr.mxu1 %v398_v16  ;;  %v397_v21 = vld [vmem:[%s3868_s4] sm:$0xff]  ;;  %v55_v23 = vld [vmem:[%s3864_s0 + $0xc8] sm:$0xff]  ;;  %v56_v25 = vld [vmem:[%s3864_s0 + $0xd0] sm:$0xff]  ;;  %v2826_v6 = vshrl.u32 %v495_v0, 7  ;;  %vm1052_vm4 = vcmask 1043459   ;;  %vm1054_vm5 = vcmask 1044484  }
  0x13   :  { %2338 = vmatmul.mubr.msk.f32.gmra.mxu0 %vm75_vm0, %v35_v17  ;;  %2365 = vmatmul.mubr.msk.f32.gmra.mxu1 %vm75_vm0, %v53_v18  ;;  %v38_v24 = vld [vmem:[%s3864_s0 + $0x40] sm:$0xff]  ;;  %v39_v26 = vld [vmem:[%s3864_s0 + $0x48] sm:$0xff]  ;;  %v57_v27 = vld [vmem:[%s3864_s0 + $0xd8] sm:$0xff]  ;;  %v494_v5 = vunpack.c.0.s8 %v493_v63  ;;  %vm1056_vm6 = vcmask 1045509   ;;  %vm1060_vm7 = vcmask 1047559   ;;  %vm1058_vm8 = vcmask 1046534  }
  0x14   :  { %2340 = vmatprep.mubr.msk.f32.mxu0 %vm75_vm0, %v36_v19  ;;  %2367 = vmatprep.mubr.msk.f32.mxu1 %vm75_vm0, %v54_v20  ;;  %v40_v28 = vld [vmem:[%s3864_s0 + $0x50] sm:$0xff]  ;;  %v58_v29 = vld [vmem:[%s3864_s0 + $0xe0] sm:$0xff]  ;;  %v41_v30 = vld [vmem:[%s3864_s0 + $0x58] sm:$0xff]  ;;  %vm1071_vm9 = vcmask 130048   ;;  %s2580_s27 = smov [#allocation4]  }
  0x15   :  { %2384 = vmatpush3.msra.mxu1 %v398_v16  ;;  %v59_v31 = vld [vmem:[%s3864_s0 + $0xe8] sm:$0xff]  ;;  %v42_v32 = vld [vmem:[%s3864_s0 + $0x60] sm:$0xff]  ;;  %v60_v33 = vld [vmem:[%s3864_s0 + $0xf0] sm:$0xff]  ;;  %v2840_v12 = vsub.s32 %v494_v5, %v2826_v6  ;;  %s2229_s28 = sshll.u32 %s2580_s27, 4  ;;  %s2230_s28 = int_to_ptr.vmem [resolvable:$true] %s2229_s28 }
  0x16   :  { %2385 = vmatprep.subr.mxu1 %v397_v21  ;;  %v43_v34 = vld [vmem:[%s3864_s0 + $0x68] sm:$0xff]  ;;  %v61_v35 = vld [vmem:[%s3864_s0 + $0xf8] sm:$0xff]  ;;  %v44_v36 = vld [vmem:[%s3864_s0 + $0x70] sm:$0xff]  ;;  %p2539_p1 = scmp.lt.s32.totalorder %s2230_s28, %s2230_s28 }
  0x17   :  { %2341 = vmatmul.mubr.msk.f32.gmra.mxu0 %vm75_vm0, %v37_v22  ;;  %2368 = vmatmul.mubr.msk.f32.gmra.mxu1 %vm75_vm0, %v55_v23  ;;  %v62_v37 = vld [vmem:[%s3865_s1] sm:$0xff]  ;;  %v45_v38 = vld [vmem:[%s3864_s0 + $0x78] sm:$0xff]  ;;  %v63_v39 = vld [vmem:[%s3865_s1 + $0x8] sm:$0xff] }
  0x18   :  { %2343 = vmatprep.mubr.msk.f32.mxu0 %vm75_vm0, %v38_v24  ;;  %2370 = vmatprep.mubr.msk.f32.mxu1 %vm75_vm0, %v56_v25  ;;  %v46_v40 = vld [vmem:[%s3864_s0 + $0x80] sm:$0xff]  ;;  %v47_v41 = vld [vmem:[%s3864_s0 + $0x88] sm:$0xff] }
  0x19   :  { %2386 = vmatpush3.msra.mxu1 %v397_v21  ;;  %v2277_v11 = vld [vmem:[%s3869_s5] ss:$0 sm:$0xff]  ;;  %v2850_v21 = vsub.s32 0, %v2826_v6 }
  0x1a   :  { %v2856_v25 = vld [vmem:[%s3867_s3] ss:$0 sm:$0xff] }
  0x1b   :  { %2344 = vmatmul.mubr.msk.f32.gmra.mxu0 %vm75_vm0, %v39_v26  ;;  %2371 = vmatmul.mubr.msk.f32.gmra.mxu1 %vm75_vm0, %v57_v27 }
  0x1c   :  { %2346 = vmatprep.mubr.msk.f32.mxu0 %vm75_vm0, %v40_v28  ;;  %2373 = vmatprep.mubr.msk.f32.mxu1 %vm75_vm0, %v58_v29 }
  0x1f   :  { %2347 = vmatmul.mubr.msk.f32.gmra.mxu0 %vm75_vm0, %v41_v30  ;;  %2374 = vmatmul.mubr.msk.f32.gmra.mxu1 %vm75_vm0, %v59_v31 }
  0x20   :  { %2349 = vmatprep.mubr.msk.f32.mxu0 %vm75_vm0, %v42_v32  ;;  %2376 = vmatprep.mubr.msk.f32.mxu1 %vm75_vm0, %v60_v33 }
  0x23   :  { %2350 = vmatmul.mubr.msk.f32.gmra.mxu0 %vm75_vm0, %v43_v34  ;;  %2377 = vmatmul.mubr.msk.f32.gmra.mxu1 %vm75_vm0, %v61_v35 }
  0x24   :  { %2352 = vmatprep.mubr.msk.f32.mxu0 %vm75_vm0, %v44_v36  ;;  %2387 = vmatprep.mubr.msk.f32.mxu1 %vm75_vm0, %v62_v37 }
  0x27   :  { %2353 = vmatmul.mubr.msk.f32.gmra.mxu0 %vm75_vm0, %v45_v38  ;;  %2388 = vmatmul.mubr.msk.f32.vlgmr.msra.gmra.mxu1 %vm75_vm0, %v63_v39 }
  0x28   :  { %2355 = vmatprep.mubr.msk.f32.mxu0 %vm75_vm0, %v46_v40 }
  0x2b   :  { %2356 = vmatmul.mubr.msk.f32.gmra.mxu0 %vm75_vm0, %v47_v41 }
  0xcb   :  { %v2333_v42 = vpop.f32.mrf.mxu0  ;;  %v2360_v43 = vpop.f32.mrf.mxu1 }
  0xcc   :  { %v244_v34 = vadd.f32 %v2333_v42, %v2856_v25  ;;  %v334_v37 = vadd.f32 %v2360_v43, %v2856_v25 }
  0xcd   :  { %v238_v44 = vpop.f32.mrf.mxu0  ;;  %v328_v45 = vpop.f32.mrf.mxu1 }
  0xce   :  { %v239_v38 = vadd.f32 %v2856_v25, %v238_v44  ;;  %v329_v39 = vadd.f32 %v2856_v25, %v328_v45  ;;  %v2892_v45 = vld [vmem:[%s3870_s6] ss:$0 sm:$0xff] }
  0xcf   :  { %v2789_v46 = vpop.f32.mrf.mxu0  ;;  %v2363_v47 = vpop.f32.mrf.mxu1 }
  0xd0   :  { %v344_v5 = vadd.f32 %v2363_v47, %v2856_v25 }
  0xd1   :  { %v2791_v48 = vpop.f32.mrf.mxu0  ;;  %v2793_v49 = vpop.f32.mrf.mxu1 }
  0xd3   :  { %v2795_v50 = vpop.f32.mrf.mxu0  ;;  %v2797_v51 = vpop.f32.mrf.mxu1 }
  0xd5   :  { %v2799_v52 = vpop.f32.mrf.mxu0  ;;  %v2801_v53 = vpop.f32.mrf.mxu1 }
  0xd7   :  { %v2803_v54 = vpop.f32.mrf.mxu0  ;;  %v2369_v55 = vpop.f32.mrf.mxu1 }
  0xd8   :  { %v364_v43 = vadd.f32 %v2369_v55, %v2856_v25 }
  0xd9   :  { %v2805_v56 = vpop.f32.mrf.mxu0  ;;  %v2807_v57 = vpop.f32.mrf.mxu1 }
  0xdb   :  { %v2809_v58 = vpop.f32.mrf.mxu0  ;;  %v2811_v59 = vpop.f32.mrf.mxu1 }
  0xdd   :  { %v2813_v60 = vpop.f32.mrf.mxu0  ;;  %v2815_v61 = vpop.f32.mrf.mxu1 }
  0xdf   :  { %v2817_v1 = vpop.f32.mrf.mxu0  ;;  %v2819_v2 = vpop.f32.mrf.mxu1 }
  0xe1   :  { %v2821_v3 = vpop.f32.mrf.mxu0  ;;  %v2823_v4 = vpop.f32.mrf.mxu1 }
  0xe3   :  { %v2828_v7 = vpop.f32.mrf.mxu0  ;;  %v2830_v8 = vpop.f32.mrf.mxu1 }
  0xe5   :  { %v2832_v9 = vpop.f32.mrf.mxu0  ;;  %v2834_v10 = vpop.f32.mrf.mxu1 }
  0xe7   :  { %v2842_v13 = vpop.f32.mrf.mxu0  ;;  %v2389_v14 = vpop.f32.mrf.mxu1 }
  0xe8   :  { %v486_v15 = vadd.f32 %v2389_v14, %v2277_v11 }
  0xe9   :  { %v2844_v16 = vpop.f32.mrf.mxu0  ;;  %v480_v17 = vpop.f32.mrf.mxu1 }
  0xea   :  { %v540_v18 = vcombine.high %v486_v15, %v486_v15  ;;  %v547_v19 = vrot.slane %v486_v15, %v2840_v12  ;;  %v2847_v20 = vadd.f32 %v2277_v11, %v480_v17 }
  0xeb   :  { %v2357_v22 = vpop.f32.mrf.mxu0 }
  0xec   :  { %v555_v23 = vcombine.high %v547_v19, %v547_v19  ;;  %v563_v24 = vrot.slane %v547_v19, %v2840_v12  ;;  %v2859_v26 = vrot.slane %v540_v18, %v2840_v12  ;;  %v498_v27 = vrot.slane %v2847_v20, %v2840_v12 }
  0xed   :  { %v318_v28 = vpop.f32.mrf.mxu0  ;;  %v324_v35 = vadd.f32 %v2357_v22, %v2856_v25 }
  0xee   :  { %v2864_v29 = vrot.slane %v555_v23, %v2840_v12  ;;  %v585_v30 = vcombine.high %v563_v24, %v563_v24  ;;  %v506_v31 = vcombine.high %v498_v27, %v498_v27  ;;  %v2867_v32 = vrot.slane %v498_v27, %v2840_v12 }
  0xef   :  { %v624_v33 = vrot.slane %v563_v24, %v2850_v21  ;;  %v319_v36 = vadd.f32 %v2856_v25, %v318_v28  ;;  %v2878_v40 = vrot.slane %v2859_v26, %v2840_v12 }
  0xf0   :  { %v592_v41 = vrot.slane %v2867_v32, %v2850_v21  ;;  %v628_v42 = vrot.slane %v2864_v29, %v2850_v21  ;;  %v2887_v44 = vrot.slane %v506_v31, %v2840_v12  ;;  %v632_v11 = vrot.slane %v585_v30, %v2850_v21 }
  0xf1   :  { %v686_v62 = vadd.f32 %v624_v33, %v324_v35  ;;  %v685_v63 = vadd.f32 %v624_v33, %v319_v36  ;;  %v640_v47 = vrot.slane %v2878_v40, %v2850_v21 }
  0xf2   :  { %v688_v17 = vadd.f32 %v628_v42, %v334_v37  ;;  %v669_v18 = vadd.f32 %v592_v41, %v239_v38  ;;  %v690_v19 = vadd.f32 %v632_v11, %v344_v5  ;;  %v670_v22 = vadd.f32 %v592_v41, %v244_v34 }
  0xf3   :  { %v718_v14 = vmax.f32 %v686_v62, 0.0  ;;  %v717_v15 = vmax.f32 %v685_v63, 0.0  ;;  %v687_v55 = vadd.f32 %v628_v42, %v329_v39  ;;  %v694_v35 = vadd.f32 %v640_v47, %v364_v43 }
  0xf4   :  { %v720_v27 = vmax.f32 %v688_v17, 0.0  ;;  %v701_v28 = vmax.f32 %v669_v18, 0.0  ;;  %v722_v31 = vmax.f32 %v690_v19, 0.0  ;;  %v702_v33 = vmax.f32 %v670_v22, 0.0 }
  0xf5   :  { %v757_v23 = vmul.f32 %v2892_v45, %v718_v14  ;;  %v756_v24 = vmul.f32 %v2892_v45, %v717_v15  ;;  %v249_v38 = vadd.f32 %v2856_v25, %v2791_v48  ;;  %v339_v39 = vadd.f32 %v2856_v25, %v2793_v49 }
  0xf6   :  { %v759_v37 = vmul.f32 %v2892_v45, %v720_v27  ;;  %v740_v34 = vmul.f32 %v2892_v45, %v701_v28  ;;  %v491_v41 = vcombine.high %v2847_v20, %v2847_v20  ;;  %v719_v62 = vmax.f32 %v687_v55, 0.0 }
  0xf7   :  { %v823_v30 = vsel %vm75_vm0, %v757_v23, 0.0  ;;  %v820_v36 = vsel %vm75_vm0, %v756_v24, 0.0  ;;  %v596_v63 = vrot.slane %v2887_v44, %v2850_v21  ;;  %v536_v42 = vcombine.high %v2867_v32, %v2867_v32 }
  0xf8   :  { %824 = vadd.xlane.f32.xlu1 %v823_v30  ;;  %821 = vadd.xlane.f32.xlu0 %v820_v36  ;;  %v761_v5 = vmul.f32 %v2892_v45, %v722_v31  ;;  %v741_v43 = vmul.f32 %v2892_v45, %v702_v33  ;;  %v726_v48 = vmax.f32 %v694_v35, 0.0  ;;  %v829_v14 = vsel %vm75_vm0, %v759_v37, 0.0 }
  0xf9   :  { %v772_v15 = vsel %vm75_vm0, %v740_v34, 0.0  ;;  %v671_v49 = vadd.f32 %v596_v63, %v249_v38  ;;  %v689_v17 = vadd.f32 %v632_v11, %v339_v39  ;;  %v254_v20 = vadd.f32 %v2789_v46, %v2856_v25 }
  0xfa   :  { %v359_v18 = vadd.f32 %v2856_v25, %v2807_v57  ;;  %v587_v32 = vcombine.high %v2864_v29, %v2864_v29  ;;  %v2924_v19 = vrot.slane %v491_v41, %v2840_v12  ;;  %v758_v22 = vmul.f32 %v2892_v45, %v719_v62 }
  0xfb   :  { %v835_v55 = vsel %vm75_vm0, %v761_v5, 0.0  ;;  %v765_v11 = vmul.f32 %v2892_v45, %v726_v48  ;;  %v672_v23 = vadd.f32 %v596_v63, %v254_v20  ;;  %v600_v46 = vrot.slane %v536_v42, %v2850_v21 }
  0xfc   :  { %830 = vadd.xlane.f32.xlu1 %v829_v14  ;;  %773 = vadd.xlane.f32.xlu0 %v772_v15  ;;  %v775_v24 = vsel %vm75_vm0, %v741_v43, 0.0  ;;  %v703_v27 = vmax.f32 %v671_v49, 0.0  ;;  %v721_v28 = vmax.f32 %v689_v17, 0.0  ;;  %v693_v57 = vadd.f32 %v640_v47, %v359_v18 }
  0xfd   :  { %v264_v29 = vadd.f32 %v2795_v50, %v2856_v25  ;;  %v354_v31 = vadd.f32 %v2797_v51, %v2856_v25  ;;  %v259_v33 = vadd.f32 %v2856_v25, %v2799_v52  ;;  %v556_v35 = vcombine.high %v2859_v26, %v2859_v26 }
  0xfe   :  { %v2941_v30 = vrot.slane %v2924_v19, %v2840_v12  ;;  %v636_v47 = vrot.slane %v587_v32, %v2850_v21  ;;  %v847_v36 = vsel %vm75_vm0, %v765_v11, 0.0  ;;  %v826_v50 = vsel %vm75_vm0, %v758_v22, 0.0 }
  0xff   :  { %v704_v37 = vmax.f32 %v672_v23, 0.0  ;;  %v674_v51 = vadd.f32 %v600_v46, %v264_v29  ;;  %v742_v34 = vmul.f32 %v2892_v45, %v703_v27  ;;  %v760_v38 = vmul.f32 %v2892_v45, %v721_v28 }
 0x100   :  { %836 = vadd.xlane.f32.xlu1 %v835_v55  ;;  %776 = vadd.xlane.f32.xlu0 %v775_v24  ;;  %v725_v52 = vmax.f32 %v693_v57, 0.0  ;;  %v673_v39 = vadd.f32 %v600_v46, %v259_v33  ;;  %v349_v26 = vadd.f32 %v2856_v25, %v2801_v53  ;;  %v2951_v41 = vrot.slane %v556_v35, %v2840_v12 }
 0x101   :  { %v692_v62 = vadd.f32 %v636_v47, %v354_v31  ;;  %v743_v63 = vmul.f32 %v2892_v45, %v704_v37  ;;  %v706_v42 = vmax.f32 %v674_v51, 0.0  ;;  %v608_v43 = vrot.slane %v2941_v30, %v2850_v21 }
 0x102   :  { %v691_v5 = vadd.f32 %v636_v47, %v349_v26  ;;  %v778_v48 = vsel %vm75_vm0, %v742_v34, 0.0  ;;  %v832_v14 = vsel %vm75_vm0, %v760_v38, 0.0  ;;  %v764_v15 = vmul.f32 %v2892_v45, %v725_v52 }
 0x103   :  { %v705_v53 = vmax.f32 %v673_v39, 0.0  ;;  %v284_v49 = vadd.f32 %v2809_v58, %v2856_v25  ;;  %v279_v17 = vadd.f32 %v2856_v25, %v2813_v60  ;;  %v586_v20 = vcombine.high %v2878_v40, %v2878_v40 }
 0x104   :  { %848 = vadd.xlane.f32.xlu1 %v847_v36  ;;  %827 = vadd.xlane.f32.xlu0 %v826_v50  ;;  %v724_v18 = vmax.f32 %v692_v62, 0.0  ;;  %v781_v32 = vsel %vm75_vm0, %v743_v63, 0.0  ;;  %v745_v22 = vmul.f32 %v2892_v45, %v706_v42  ;;  %v723_v55 = vmax.f32 %v691_v5, 0.0 }
 0x105   :  { %v678_v11 = vadd.f32 %v608_v43, %v284_v49  ;;  %v844_v23 = vsel %vm75_vm0, %v764_v15, 0.0  ;;  %v744_v46 = vmul.f32 %v2892_v45, %v705_v53  ;;  %v677_v58 = vadd.f32 %v608_v43, %v279_v17 }
 0x106   :  { %v644_v24 = vrot.slane %v2951_v41, %v2850_v21  ;;  %v374_v60 = vadd.f32 %v2811_v59, %v2856_v25  ;;  %v369_v40 = vadd.f32 %v2856_v25, %v2815_v61  ;;  %v384_v27 = vadd.f32 %v2819_v2, %v2856_v25 }
 0x107   :  { %v507_v28 = vcombine.high %v2924_v19, %v2924_v19  ;;  %v538_v57 = vcombine.high %v2887_v44, %v2887_v44  ;;  %v648_v29 = vrot.slane %v586_v20, %v2850_v21  ;;  %v787_v31 = vsel %vm75_vm0, %v745_v22, 0.0 }
 0x108   :  { %779 = vadd.xlane.f32.xlu1 %v778_v48  ;;  %833 = vadd.xlane.f32.xlu0 %v832_v14  ;;  %v763_v59 = vmul.f32 %v2892_v45, %v724_v18  ;;  %v762_v33 = vmul.f32 %v2892_v45, %v723_v55  ;;  %v710_v61 = vmax.f32 %v678_v11, 0.0  ;;  %v784_v35 = vsel %vm75_vm0, %v744_v46, 0.0 }
 0x109   :  { %v709_v47 = vmax.f32 %v677_v58, 0.0  ;;  %v696_v36 = vadd.f32 %v644_v24, %v374_v60  ;;  %v695_v2 = vadd.f32 %v644_v24, %v369_v40  ;;  %v379_v19 = vadd.f32 %v2856_v25, %v2823_v4 }
 0x10a   :  { %v535_v44 = vrot.slane %v507_v28, %v2840_v12  ;;  %v698_v50 = vadd.f32 %v648_v29, %v384_v27  ;;  %v841_v37 = vsel %vm75_vm0, %v763_v59, 0.0  ;;  %v838_v51 = vsel %vm75_vm0, %v762_v33, 0.0 }
 0x10b   :  { %v697_v34 = vadd.f32 %v648_v29, %v379_v19  ;;  %v604_v38 = vrot.slane %v538_v57, %v2850_v21  ;;  %v749_v52 = vmul.f32 %v2892_v45, %v710_v61  ;;  %v748_v39 = vmul.f32 %v2892_v45, %v709_v47 }
 0x10c   :  { %782 = vadd.xlane.f32.xlu1 %v781_v32  ;;  %845 = vadd.xlane.f32.xlu0 %v844_v23  ;;  %v728_v26 = vmax.f32 %v696_v36, 0.0  ;;  %v727_v62 = vmax.f32 %v695_v2, 0.0  ;;  %v274_v4 = vadd.f32 %v2803_v54, %v2856_v25  ;;  %v269_v12 = vadd.f32 %v2856_v25, %v2805_v56 }
 0x10d   :  { %v294_v63 = vadd.f32 %v2817_v1, %v2856_v25  ;;  %v730_v42 = vmax.f32 %v698_v50, 0.0  ;;  %v612_v5 = vrot.slane %v535_v44, %v2850_v21  ;;  %v537_v43 = vcombine.high %v2941_v30, %v2941_v30 }
 0x10e   :  { %v729_v48 = vmax.f32 %v697_v34, 0.0  ;;  %v676_v14 = vadd.f32 %v604_v38, %v274_v4  ;;  %v675_v15 = vadd.f32 %v604_v38, %v269_v12  ;;  %v799_v53 = vsel %vm75_vm0, %v749_v52, 0.0 }
 0x10f   :  { %v796_v54 = vsel %vm75_vm0, %v748_v39, 0.0  ;;  %v767_v56 = vmul.f32 %v2892_v45, %v728_v26  ;;  %v766_v49 = vmul.f32 %v2892_v45, %v727_v62  ;;  %v289_v1 = vadd.f32 %v2856_v25, %v2821_v3 }
 0x110   :  { %788 = vadd.xlane.f32.xlu1 %v787_v31  ;;  %785 = vadd.xlane.f32.xlu0 %v784_v35  ;;  %v769_v17 = vmul.f32 %v2892_v45, %v730_v42  ;;  %v680_v20 = vadd.f32 %v612_v5, %v294_v63  ;;  %v768_v30 = vmul.f32 %v2892_v45, %v729_v48  ;;  %v708_v18 = vmax.f32 %v676_v14, 0.0 }
 0x111   :  { %v707_v32 = vmax.f32 %v675_v15, 0.0  ;;  %v679_v22 = vadd.f32 %v612_v5, %v289_v1  ;;  %v853_v55 = vsel %vm75_vm0, %v767_v56, 0.0  ;;  %v850_v11 = vsel %vm75_vm0, %v766_v49, 0.0 }
 0x112   :  { %v616_v23 = vrot.slane %v537_v43, %v2850_v21  ;;  %v539_v46 = vcombine.high %v535_v44, %v535_v44  ;;  %v304_v3 = vadd.f32 %v2828_v7, %v2856_v25  ;;  %v299_v58 = vadd.f32 %v2856_v25, %v2832_v9 }
 0x113   :  { %v859_v24 = vsel %vm75_vm0, %v769_v17, 0.0  ;;  %v712_v60 = vmax.f32 %v680_v20, 0.0  ;;  %v747_v40 = vmul.f32 %v2892_v45, %v708_v18  ;;  %v746_v27 = vmul.f32 %v2892_v45, %v707_v32 }
 0x114   :  { %842 = vadd.xlane.f32.xlu1 %v841_v37  ;;  %839 = vadd.xlane.f32.xlu0 %v838_v51  ;;  %v711_v28 = vmax.f32 %v679_v22, 0.0  ;;  %v588_v57 = vcombine.high %v2951_v41, %v2951_v41  ;;  %v856_v29 = vsel %vm75_vm0, %v768_v30, 0.0  ;;  %v682_v31 = vadd.f32 %v616_v23, %v304_v3 }
 0x115   :  { %v681_v59 = vadd.f32 %v616_v23, %v299_v58  ;;  %v620_v7 = vrot.slane %v539_v46, %v2850_v21  ;;  %v314_v9 = vadd.f32 %v2842_v13, %v2856_v25  ;;  %v309_v33 = vadd.f32 %v2856_v25, %v2844_v16 }
 0x116   :  { %v751_v61 = vmul.f32 %v2892_v45, %v712_v60  ;;  %v793_v35 = vsel %vm75_vm0, %v747_v40, 0.0  ;;  %v790_v41 = vsel %vm75_vm0, %v746_v27, 0.0  ;;  %v750_v47 = vmul.f32 %v2892_v45, %v711_v28 }
 0x117   :  { %v652_v36 = vrot.slane %v588_v57, %v2850_v21  ;;  %v714_v2 = vmax.f32 %v682_v31, 0.0  ;;  %v713_v19 = vmax.f32 %v681_v59, 0.0  ;;  %v684_v44 = vadd.f32 %v620_v7, %v314_v9 }
 0x118   :  { %800 = vadd.xlane.f32.xlu1 %v799_v53  ;;  %797 = vadd.xlane.f32.xlu0 %v796_v54  ;;  %v683_v50 = vadd.f32 %v620_v7, %v309_v33  ;;  %v394_v13 = vadd.f32 %v2830_v8, %v2856_v25  ;;  %v389_v16 = vadd.f32 %v2856_v25, %v2834_v10  ;;  %v805_v37 = vsel %vm75_vm0, %v751_v61, 0.0 }
 0x119   :  { %v802_v51 = vsel %vm75_vm0, %v750_v47, 0.0  ;;  %v753_v52 = vmul.f32 %v2892_v45, %v714_v2  ;;  %v752_v39 = vmul.f32 %v2892_v45, %v713_v19  ;;  %v716_v26 = vmax.f32 %v684_v44, 0.0 }
 0x11a   :  { %v700_v34 = vadd.f32 %v652_v36, %v394_v13  ;;  %v699_v38 = vadd.f32 %v652_v36, %v389_v16  ;;  %v715_v62 = vmax.f32 %v683_v50, 0.0 }
 0x11b   :  { %v811_v10 = vsel %vm75_vm0, %v753_v52, 0.0  ;;  %v808_v25 = vsel %vm75_vm0, %v752_v39, 0.0  ;;  %v755_v12 = vmul.f32 %v2892_v45, %v716_v26 }
 0x11c   :  { %854 = vadd.xlane.f32.xlu1 %v853_v55  ;;  %851 = vadd.xlane.f32.xlu0 %v850_v11  ;;  %v732_v8 = vmax.f32 %v700_v34, 0.0  ;;  %v731_v4 = vmax.f32 %v699_v38, 0.0  ;;  %v754_v63 = vmul.f32 %v2892_v45, %v715_v62 }
 0x11d   :  { %v817_v42 = vsel %vm75_vm0, %v755_v12, 0.0 }
 0x11e   :  { %v814_v5 = vsel %vm75_vm0, %v754_v63, 0.0  ;;  %v771_v43 = vmul.f32 %v2892_v45, %v732_v8  ;;  %v770_v48 = vmul.f32 %v2892_v45, %v731_v4 }
 0x120   :  { %860 = vadd.xlane.f32.xlu1 %v859_v24  ;;  %857 = vadd.xlane.f32.xlu0 %v856_v29  ;;  %v865_v14 = vsel %vm75_vm0, %v771_v43, 0.0  ;;  %v862_v15 = vsel %vm75_vm0, %v770_v48, 0.0  ;;  %v901_v24 = vand.u32 127, %v495_v0 }
 0x122   :  { %v906_v27 = vadd.s32 4294967288, %v901_v24  ;;  %v3101_v31 = vsub.s32 %v901_v24, %v2826_v6 }
 0x124   :  { %794 = vadd.xlane.f32.xlu1 %v793_v35  ;;  %791 = vadd.xlane.f32.xlu0 %v790_v41  ;;  %v3098_v29 = vsub.s32 %v906_v27, %v2826_v6 }
 0x128   :  { %806 = vadd.xlane.f32.xlu1 %v805_v37  ;;  %803 = vadd.xlane.f32.xlu0 %v802_v51 }
 0x12c   :  { %812 = vadd.xlane.f32.xlu1 %v811_v10  ;;  %809 = vadd.xlane.f32.xlu0 %v808_v25 }
 0x130   :  { %818 = vadd.xlane.f32.xlu1 %v817_v42  ;;  %815 = vadd.xlane.f32.xlu0 %v814_v5 }
 0x134   :  { %866 = vadd.xlane.f32.xlu1 %v865_v14  ;;  %863 = vadd.xlane.f32.xlu0 %v862_v15 }
 0x181   :  { %v3052_v53 = vpop.xlane.xlu1 %824  ;;  %v3054_v54 = vpop.xlane.xlu0 %821 }
 0x182   :  { %v983_v13 = vrot.slane %v3052_v53, %v3098_v29  ;;  %v979_v16 = vrot.slane %v3054_v54, %v3101_v31 }
 0x184   :  { %v984_v43 = vsel %vm911_vm1, %v983_v13, %v979_v16 }
 0x185   :  { %v3056_v56 = vpop.xlane.xlu1 %830  ;;  %v3058_v49 = vpop.xlane.xlu0 %773 }
 0x186   :  { %v905_v41 = vrot.slane %v3058_v49, %v3101_v31  ;;  %v992_v19 = vrot.slane %v3056_v56, %v3098_v29 }
 0x189   :  { %v3060_v1 = vpop.xlane.xlu1 %836  ;;  %v3062_v17 = vpop.xlane.xlu0 %776 }
 0x18a   :  { %v910_v0 = vrot.slane %v3062_v17, %v3098_v29  ;;  %v1001_v10 = vrot.slane %v3060_v1, %v3098_v29 }
 0x18c   :  { %v912_v37 = vsel %vm911_vm1, %v910_v0, %v905_v41 }
 0x18d   :  { %v3064_v45 = vpop.xlane.xlu1 %848  ;;  %v3066_v20 = vpop.xlane.xlu0 %827 }
 0x18e   :  { %v988_v33 = vrot.slane %v3066_v20, %v3101_v31 }
 0x190   :  { %v993_v34 = vsel %vm911_vm1, %v992_v19, %v988_v33 }
 0x191   :  { %v3068_v30 = vpop.xlane.xlu1 %779  ;;  %v3070_v18 = vpop.xlane.xlu0 %833  ;;  %v1062_v24 = vsel %vm1048_vm2, %v993_v34, %v984_v43 }
 0x192   :  { %v916_v47 = vrot.slane %v3068_v30, %v3101_v31  ;;  %v997_v38 = vrot.slane %v3070_v18, %v3101_v31 }
 0x194   :  { %v1002_v27 = vsel %vm911_vm1, %v1001_v10, %v997_v38 }
 0x195   :  { %v3072_v32 = vpop.xlane.xlu1 %782  ;;  %v3074_v22 = vpop.xlane.xlu0 %845 }
 0x196   :  { %v920_v9 = vrot.slane %v3072_v32, %v3098_v29  ;;  %v1015_v0 = vrot.slane %v3074_v22, %v3101_v31 }
 0x198   :  { %v921_v51 = vsel %vm911_vm1, %v920_v9, %v916_v47 }
 0x199   :  { %v3076_v55 = vpop.xlane.xlu1 %788  ;;  %v3078_v11 = vpop.xlane.xlu0 %785  ;;  %v1049_v25 = vsel %vm1048_vm2, %v921_v51, %v912_v37  ;;  %v1063_v37 = vsel %vm1050_vm3, %v1002_v27, %v1062_v24 }
 0x19a   :  { %v929_v61 = vrot.slane %v3076_v55, %v3098_v29  ;;  %v925_v35 = vrot.slane %v3078_v11, %v3101_v31 }
 0x19c   :  { %v930_v52 = vsel %vm911_vm1, %v929_v61, %v925_v35 }
 0x19d   :  { %v3080_v23 = vpop.xlane.xlu1 %842  ;;  %v3082_v46 = vpop.xlane.xlu0 %839  ;;  %v1051_v48 = vsel %vm1050_vm3, %v930_v52, %v1049_v25  ;;  %v1019_v52 = vrot.slane %v3064_v45, %v3098_v29 }
 0x19e   :  { %v1010_v39 = vrot.slane %v3080_v23, %v3098_v29  ;;  %v1006_v26 = vrot.slane %v3082_v46, %v3101_v31 }
 0x19f   :  { %v1020_v10 = vsel %vm911_vm1, %v1019_v52, %v1015_v0 }
 0x1a0   :  { %v1011_v33 = vsel %vm911_vm1, %v1010_v39, %v1006_v26 }
 0x1a1   :  { %v3084_v3 = vpop.xlane.xlu1 %800  ;;  %v3086_v58 = vpop.xlane.xlu0 %797  ;;  %v1064_v39 = vsel %vm1052_vm4, %v1011_v33, %v1063_v37 }
 0x1a2   :  { %v947_v12 = vrot.slane %v3084_v3, %v3098_v29  ;;  %v943_v63 = vrot.slane %v3086_v58, %v3101_v31  ;;  %v1065_v24 = vsel %vm1054_vm5, %v1020_v10, %v1064_v39 }
 0x1a4   :  { %v948_v47 = vsel %vm911_vm1, %v947_v12, %v943_v63 }
 0x1a5   :  { %v3089_v60 = vpop.xlane.xlu1 %854  ;;  %v3091_v40 = vpop.xlane.xlu0 %851 }
 0x1a6   :  { %v1028_v61 = vrot.slane %v3089_v60, %v3098_v29  ;;  %v1024_v35 = vrot.slane %v3091_v40, %v3101_v31 }
 0x1a9   :  { %v3093_v28 = vpop.xlane.xlu1 %860  ;;  %v3095_v57 = vpop.xlane.xlu0 %857 }
 0x1ad   :  { %v3103_v59 = vpop.xlane.xlu1 %794  ;;  %v3105_v7 = vpop.xlane.xlu0 %791 }
 0x1ae   :  { %v938_v36 = vrot.slane %v3103_v59, %v3098_v29  ;;  %v934_v2 = vrot.slane %v3105_v7, %v3101_v31 }
 0x1b0   :  { %v939_v62 = vsel %vm911_vm1, %v938_v36, %v934_v2  ;;  %v1037_v36 = vrot.slane %v3093_v28, %v3098_v29  ;;  %v1033_v2 = vrot.slane %v3095_v57, %v3101_v31 }
 0x1b1   :  { %v3127_v44 = vpop.xlane.xlu1 %806  ;;  %v3129_v50 = vpop.xlane.xlu0 %803  ;;  %v1053_v9 = vsel %vm1052_vm4, %v939_v62, %v1051_v48  ;;  %v1029_v62 = vsel %vm911_vm1, %v1028_v61, %v1024_v35  ;;  %v2579_v35 = vmov 0  }
 0x1b2   :  { %v956_v8 = vrot.slane %v3127_v44, %v3098_v29  ;;  %v952_v4 = vrot.slane %v3129_v50, %v3101_v31  ;;  %v1055_v38 = vsel %vm1054_vm5, %v948_v47, %v1053_v9  ;;  %v1038_v43 = vsel %vm911_vm1, %v1037_v36, %v1033_v2  ;;  %2405 = vset.pattern.permute.xlu1 %v2579_v35 }
 0x1b3   :  { %v1066_v27 = vsel %vm1056_vm6, %v1029_v62, %v1065_v24  ;;  %2404 = vset.pattern.permute.xlu0 %v2579_v35  ;;  %v3224_v36 = vsub.s32 1, %v2826_v6  ;;  %v3238_v62 = vsub.s32 3, %v2826_v6 }
 0x1b4   :  { %v957_v41 = vsel %vm911_vm1, %v956_v8, %v952_v4  ;;  %v1067_v9 = vsel %vm1058_vm8, %v1038_v43, %v1066_v27 }
 0x1b5   :  { %v3157_v42 = vpop.xlane.xlu1 %812  ;;  %v3159_v5 = vpop.xlane.xlu0 %809  ;;  %v1057_v26 = vsel %vm1056_vm6, %v957_v41, %v1055_v38 }
 0x1b6   :  { %v965_v14 = vrot.slane %v3157_v42, %v3098_v29  ;;  %v961_v15 = vrot.slane %v3159_v5, %v3101_v31 }
 0x1b8   :  { %v966_v16 = vsel %vm911_vm1, %v965_v14, %v961_v15 }
 0x1b9   :  { %v3183_v19 = vpop.xlane.xlu1 %818  ;;  %v3185_v13 = vpop.xlane.xlu0 %815  ;;  %v1059_v4 = vsel %vm1058_vm8, %v966_v16, %v1057_v26 }
 0x1ba   :  { %v974_v51 = vrot.slane %v3183_v19, %v3098_v29  ;;  %v970_v34 = vrot.slane %v3185_v13, %v3101_v31 }
 0x1bc   :  { %v975_v8 = vsel %vm911_vm1, %v974_v51, %v970_v34  ;;  %v3231_v51 = vsub.s32 2, %v2826_v6 }
 0x1bd   :  { %v3202_v25 = vpop.xlane.xlu1 %866  ;;  %v3204_v12 = vpop.xlane.xlu0 %863  ;;  %v1061_v63 = vsel %vm1060_vm7, %v975_v8, %v1059_v4 }
 0x1be   :  { %v1046_v48 = vrot.slane %v3202_v25, %v3098_v29  ;;  %v1042_v14 = vrot.slane %v3204_v12, %v3101_v31  ;;  %v1072_v15 = vsel %vm1071_vm9, %v1061_v63, -inf }
 0x1bf   :  { %1073 = vmax.xlane.f32.xlu0 %v1072_v15 }
 0x1c0   :  { %v1047_v0 = vsel %vm911_vm1, %v1046_v48, %v1042_v14  ;;  %v3252_v14 = vsub.s32 5, %v2826_v6 }
 0x1c1   :  { %v1068_v33 = vsel %vm1060_vm7, %v1047_v0, %v1067_v9  ;;  %v3259_v0 = vsub.s32 6, %v2826_v6 }
 0x1c2   :  { %v1075_v61 = vsel %vm1071_vm9, %v1068_v33, -inf }
 0x1c3   :  { %1076 = vmax.xlane.f32.xlu1 %v1075_v61 }
 0x248   :  { %v3266_v35 = vpop.xlane.xlu0 %1073 }
 0x24c   :  { %v3219_v41 = vpop.xlane.xlu1 %1076 }
 0x24d   :  { %v1115_v47 = vrot.slane %v3219_v41, %v2850_v21  ;;  %v1119_v2 = vrot.slane %v3219_v41, %v3224_v36  ;;  %v1123_v34 = vrot.slane %v3219_v41, %v3231_v51 }
 0x24f   :  { %v1176_v16 = vsub.f32 %v3054_v54, %v1115_v47  ;;  %v1177_v37 = vsub.f32 %v3052_v53, %v1115_v47  ;;  %v1178_v38 = vsub.f32 %v3066_v20, %v1119_v2  ;;  %v1179_v39 = vsub.f32 %v3056_v56, %v1119_v2 }
 0x250   :  { %v1127_v54 = vrot.slane %v3219_v41, %v3238_v62  ;;  %v1180_v53 = vsub.f32 %v3070_v18, %v1123_v34  ;;  %v1181_v4 = vsub.f32 %v3060_v1, %v1123_v34  ;;  %v3245_v20 = vsub.s32 4, %v2826_v6 }
 0x251   :  { %v1224_v52 = vmul.f32 1.442695, %v1176_v16  ;;  %v1226_v26 = vmul.f32 1.442695, %v1177_v37  ;;  %v1228_v8 = vmul.f32 1.442695, %v1178_v38  ;;  %v1135_v1 = vrot.slane %v3219_v41, %v3252_v14 }
 0x252   :  { %v1230_v10 = vmul.f32 1.442695, %v1179_v39  ;;  %v1131_v56 = vrot.slane %v3219_v41, %v3245_v20  ;;  %v1182_v63 = vsub.f32 %v3082_v46, %v1127_v54  ;;  %v1232_v43 = vmul.f32 1.442695, %v1180_v53 }
 0x253   :  { %2406 = vpow2.f32 %v1224_v52  ;;  %v1183_v48 = vsub.f32 %v3080_v23, %v1127_v54  ;;  %v1234_v18 = vmul.f32 1.442695, %v1181_v4  ;;  %v1139_v23 = vrot.slane %v3219_v41, %v3259_v0 }
 0x254   :  { %2408 = vpow2.f32 %v1226_v26  ;;  %v1184_v15 = vsub.f32 %v3074_v22, %v1131_v56  ;;  %v1236_v24 = vmul.f32 1.442695, %v1182_v63  ;;  %v1185_v27 = vsub.f32 %v3064_v45, %v1131_v56 }
 0x255   :  { %2410 = vpow2.f32 %v1228_v8  ;;  %v1238_v46 = vmul.f32 1.442695, %v1183_v48  ;;  %v1187_v9 = vsub.f32 %v3089_v60, %v1135_v1  ;;  %v1186_v22 = vsub.f32 %v3091_v40, %v1135_v1 }
 0x256   :  { %2412 = vpow2.f32 %v1230_v10  ;;  %v1240_v33 = vmul.f32 1.442695, %v1184_v15  ;;  %v1242_v45 = vmul.f32 1.442695, %v1185_v27  ;;  %v1083_v2 = vrot.slane %v3266_v35, %v2850_v21 }
 0x257   :  { %2414 = vpow2.f32 %v1232_v43  ;;  %v1189_v60 = vsub.f32 %v3093_v28, %v1139_v23  ;;  %v1246_v16 = vmul.f32 1.442695, %v1187_v9  ;;  %v1188_v34 = vsub.f32 %v3095_v57, %v1139_v23 }
 0x258   :  { %2416 = vpow2.f32 %v1234_v18  ;;  %v1244_v40 = vmul.f32 1.442695, %v1186_v22  ;;  %v3285_v52 = vrot.slane %v3266_v35, %v3245_v20  ;;  %v1160_v28 = vsub.f32 %v3058_v49, %v1083_v2 }
 0x259   :  { %2418 = vpow2.f32 %v1236_v24  ;;  %v1250_v39 = vmul.f32 1.442695, %v1189_v60  ;;  %v1087_v57 = vrot.slane %v3266_v35, %v3224_v36  ;;  %v1161_v54 = vsub.f32 %v3062_v17, %v1083_v2 }
 0x25a   :  { %2420 = vpow2.f32 %v1238_v46  ;;  %v1248_v53 = vmul.f32 1.442695, %v1188_v34  ;;  %v3299_v49 = vrot.slane %v3266_v35, %v3252_v14  ;;  %v1169_v4 = vsub.f32 %v3084_v3, %v3285_v52 }
 0x25b   :  { %2422 = vpow2.f32 %v1240_v33  ;;  %v1192_v10 = vmul.f32 1.442695, %v1160_v28  ;;  %v1162_v17 = vsub.f32 %v3068_v30, %v1087_v57  ;;  %v1194_v63 = vmul.f32 1.442695, %v1161_v54 }
 0x25c   :  { %2424 = vpow2.f32 %v1242_v45  ;;  %v3310_v48 = vsub.s32 7, %v2826_v6  ;;  %v3315_v3 = vrot.slane %v3266_v35, %v3259_v0  ;;  %v1171_v18 = vsub.f32 %v3127_v44, %v3299_v49 }
 0x25d   :  { %2426 = vpow2.f32 %v1246_v16  ;;  %v1210_v30 = vmul.f32 1.442695, %v1169_v4  ;;  %v1091_v15 = vrot.slane %v3266_v35, %v3231_v51  ;;  %v1163_v24 = vsub.f32 %v3072_v32, %v1087_v57 }
 0x25e   :  { %2428 = vpow2.f32 %v1244_v40  ;;  %3889 = vst [vmem:[#allocation8_spill] sm:$0xff] %v3310_v48  ;;  %v1196_v6 = vmul.f32 1.442695, %v1162_v17  ;;  %v3330_v44 = vrot.slane %v3266_v35, %v3310_v48  ;;  %v1173_v46 = vsub.f32 %v3157_v42, %v3315_v3 }
 0x25f   :  { %2430 = vpow2.f32 %v1250_v39  ;;  %v1214_v23 = vmul.f32 1.442695, %v1171_v18  ;;  %v1164_v32 = vsub.f32 %v3078_v11, %v1091_v15  ;;  %v1198_v33 = vmul.f32 1.442695, %v1163_v24 }
 0x260   :  { %v3264_v61 = vpop.eup %2406  ;;  %2432 = vpow2.f32 %v1248_v53  ;;  %v1175_v45 = vsub.f32 %v3183_v19, %v3330_v44  ;;  %v1218_v2 = vmul.f32 1.442695, %v1173_v46  ;;  %v3345_v42 = vrot.slane %v3219_v41, %v3310_v48 }
 0x261   :  { %v3269_v47 = vpop.eup %2408  ;;  %1337 = vperm.xlu0 %2404, %v3264_v61   ;;  %2434 = vpow2.f32 %v1192_v10  ;;  %v1095_v11 = vrot.slane %v3266_v35, %v3238_v62  ;;  %v1165_v16 = vsub.f32 %v3076_v55, %v1091_v15  ;;  %v1200_v34 = vmul.f32 1.442695, %v1164_v32 }
 0x262   :  { %1340 = vperm.xlu1 %2405, %v3269_v47   ;;  %v3276_v37 = vpop.eup %2410  ;;  %2436 = vpow2.f32 %v1194_v63  ;;  %v1222_v19 = vmul.f32 1.442695, %v1175_v45  ;;  %v1191_v41 = vsub.f32 %v3202_v25, %v3345_v42  ;;  %v1168_v10 = vsub.f32 %v3086_v58, %v3285_v52 }
 0x263   :  { %v3279_v38 = vpop.eup %2412  ;;  %2438 = vpow2.f32 %v1210_v30  ;;  %v1166_v39 = vsub.f32 %v3105_v7, %v1095_v11  ;;  %v1202_v35 = vmul.f32 1.442695, %v1165_v16  ;;  %v1167_v53 = vsub.f32 %v3103_v59, %v1095_v11 }
 0x264   :  { %v3288_v26 = vpop.eup %2414  ;;  %2440 = vpow2.f32 %v1196_v6  ;;  %v1254_v57 = vmul.f32 1.442695, %v1191_v41  ;;  %v1170_v18 = vsub.f32 %v3129_v50, %v3299_v49  ;;  %v1208_v30 = vmul.f32 1.442695, %v1168_v10 }
 0x265   :  { %1343 = vperm.xlu0 %2404, %v3276_v37   ;;  %v3293_v8 = vpop.eup %2416  ;;  %2442 = vpow2.f32 %v1214_v23  ;;  %v1204_v25 = vmul.f32 1.442695, %v1166_v39  ;;  %v1206_v17 = vmul.f32 1.442695, %v1167_v53  ;;  %v1172_v52 = vsub.f32 %v3159_v5, %v3315_v3 }
 0x266   :  { %1346 = vperm.xlu1 %2405, %v3279_v38   ;;  %v3303_v56 = vpop.eup %2418  ;;  %2444 = vpow2.f32 %v1198_v33  ;;  %v1212_v24 = vmul.f32 1.442695, %v1170_v18  ;;  %v1174_v49 = vsub.f32 %v3185_v13, %v3330_v44  ;;  %v1190_v3 = vsub.f32 %v3204_v12, %v3345_v42 }
 0x267   :  { %v3306_v43 = vpop.eup %2420  ;;  %2446 = vpow2.f32 %v1218_v2  ;;  %v1216_v46 = vmul.f32 1.442695, %v1172_v52 }
 0x268   :  { %v3319_v1 = vpop.eup %2422  ;;  %2448 = vpow2.f32 %v1200_v34  ;;  %v1220_v5 = vmul.f32 1.442695, %v1174_v49  ;;  %v1252_v33 = vmul.f32 1.442695, %v1190_v3 }
 0x269   :  { %1349 = vperm.xlu0 %2404, %v3288_v26   ;;  %v3324_v27 = vpop.eup %2424  ;;  %2450 = vpow2.f32 %v1222_v19 }
 0x26a   :  { %1352 = vperm.xlu1 %2405, %v3293_v8   ;;  %v3334_v9 = vpop.eup %2426  ;;  %2452 = vpow2.f32 %v1202_v35 }
 0x26b   :  { %v3337_v22 = vpop.eup %2428  ;;  %2454 = vpow2.f32 %v1254_v57 }
 0x26c   :  { %v3347_v60 = vpop.eup %2430  ;;  %2456 = vpow2.f32 %v1204_v25 }
 0x26d   :  { %1355 = vperm.xlu0 %2404, %v3303_v56   ;;  %v3352_v40 = vpop.eup %2432  ;;  %2458 = vpow2.f32 %v1206_v17 }
 0x26e   :  { %1358 = vperm.xlu1 %2405, %v3306_v43   ;;  %v3358_v28 = vpop.eup %2434  ;;  %2460 = vpow2.f32 %v1208_v30 }
 0x26f   :  { %v3361_v55 = vpop.eup %2436  ;;  %2462 = vpow2.f32 %v1212_v24 }
 0x270   :  { %v3365_v54 = vpop.eup %2438  ;;  %2464 = vpow2.f32 %v1216_v46 }
 0x271   :  { %1361 = vperm.xlu0 %2404, %v3319_v1   ;;  %3890 = vst [vmem:[#allocation9_spill] sm:$0xff] %v3365_v54  ;;  %v3368_v4 = vpop.eup %2440  ;;  %2466 = vpow2.f32 %v1220_v5 }
 0x272   :  { %1364 = vperm.xlu1 %2405, %v3324_v27   ;;  %v3372_v7 = vpop.eup %2442  ;;  %2468 = vpow2.f32 %v1252_v33 }
 0x273   :  { %3891 = vst [vmem:[#allocation10_spill] sm:$0xff] %v3372_v7  ;;  %v3376_v63 = vpop.eup %2444 }
 0x274   :  { %v3380_v59 = vpop.eup %2446 }
 0x275   :  { %1370 = vperm.xlu0 %2404, %v3334_v9   ;;  %3892 = vst [vmem:[#allocation11_spill] sm:$0xff] %v3380_v59  ;;  %v3384_v15 = vpop.eup %2448 }
 0x276   :  { %1367 = vperm.xlu1 %2405, %v3337_v22   ;;  %3893 = vst [vmem:[#allocation12_spill] sm:$0xff] %v3384_v15  ;;  %v3388_v58 = vpop.eup %2450 }
 0x277   :  { %3894 = vst [vmem:[#allocation13_spill] sm:$0xff] %v3388_v58  ;;  %v3392_v6 = vpop.eup %2452 }
 0x278   :  { %3895 = vst [vmem:[#allocation14_spill] sm:$0xff] %v3392_v6  ;;  %v3396_v50 = vpop.eup %2454 }
 0x279   :  { %1376 = vperm.xlu0 %2404, %v3347_v60   ;;  %3896 = vst [vmem:[#allocation15_spill] sm:$0xff] %v3396_v50  ;;  %v3400_v23 = vpop.eup %2456 }
 0x27a   :  { %1373 = vperm.xlu1 %2405, %v3352_v40   ;;  %3897 = vst [vmem:[#allocation16_spill] sm:$0xff] %v3400_v23  ;;  %v3406_v32 = vpop.eup %2458 }
 0x27b   :  { %3898 = vst [vmem:[#allocation17_spill] sm:$0xff] %v3406_v32  ;;  %v3409_v13 = vpop.eup %2460 }
 0x27c   :  { %3899 = vst [vmem:[#allocation18_spill] sm:$0xff] %v3409_v13  ;;  %v3412_v44 = vpop.eup %2462 }
 0x27d   :  { %1289 = vperm.xlu0 %2404, %v3358_v28   ;;  %3900 = vst [vmem:[#allocation19_spill] sm:$0xff] %v3412_v44  ;;  %v3415_v45 = vpop.eup %2464 }
 0x27e   :  { %1292 = vperm.xlu1 %2405, %v3361_v55   ;;  %3901 = vst [vmem:[#allocation20_spill] sm:$0xff] %v3415_v45  ;;  %v3418_v12 = vpop.eup %2466 }
 0x27f   :  { %3902 = vst [vmem:[#allocation21_spill] sm:$0xff] %v3418_v12  ;;  %v3421_v2 = vpop.eup %2468 }
 0x280   :  { %3903 = vst [vmem:[#allocation22_spill] sm:$0xff] %v3421_v2 }
 0x281   :  { %1316 = vperm.xlu0 %2404, %v3365_v54  }
 0x282   :  { %1295 = vperm.xlu1 %2405, %v3368_v4  }
 0x285   :  { %1322 = vperm.xlu0 %2404, %v3372_v7  }
 0x286   :  { %1298 = vperm.xlu1 %2405, %v3376_v63  }
 0x289   :  { %1328 = vperm.xlu0 %2404, %v3380_v59  }
 0x28a   :  { %1301 = vperm.xlu1 %2405, %v3384_v15  }
 0x28d   :  { %1334 = vperm.xlu0 %2404, %v3388_v58  }
 0x28e   :  { %1304 = vperm.xlu1 %2405, %v3392_v6  }
 0x291   :  { %1382 = vperm.xlu0 %2404, %v3396_v50  }
 0x292   :  { %1307 = vperm.xlu1 %2405, %v3400_v23  }
 0x296   :  { %1310 = vperm.xlu1 %2405, %v3406_v32  }
 0x29a   :  { %1313 = vperm.xlu1 %2405, %v3409_v13  }
 0x29e   :  { %1319 = vperm.xlu1 %2405, %v3412_v44  }
 0x2a2   :  { %1325 = vperm.xlu1 %2405, %v3415_v45  }
 0x2a6   :  { %1331 = vperm.xlu1 %2405, %v3418_v12  }
 0x2aa   :  { %1379 = vperm.xlu1 %2405, %v3421_v2  }
 0x2dc   :  { %v1338_v42 = vpop.permute.xlu0 %1337 }
 0x2dd   :  { %v1341_v11 = vpop.permute.xlu1 %1340  ;;  %v1459_v58 = vrot.slane %v1338_v42, %v3101_v31 }
 0x2de   :  { %v1463_v12 = vrot.slane %v1341_v11, %v3098_v29 }
 0x2e0   :  { %v1344_v34 = vpop.permute.xlu0 %1343  ;;  %v1464_v32 = vsel %vm911_vm1, %v1463_v12, %v1459_v58 }
 0x2e1   :  { %v1347_v16 = vpop.permute.xlu1 %1346  ;;  %v1468_v44 = vrot.slane %v1344_v34, %v3101_v31 }
 0x2e2   :  { %v1472_v59 = vrot.slane %v1347_v16, %v3098_v29 }
 0x2e4   :  { %v1350_v41 = vpop.permute.xlu0 %1349 }
 0x2e5   :  { %v1353_v19 = vpop.permute.xlu1 %1352  ;;  %v1477_v13 = vrot.slane %v1350_v41, %v3101_v31 }
 0x2e6   :  { %v1481_v7 = vrot.slane %v1353_v19, %v3098_v29  ;;  %v1473_v19 = vsel %vm911_vm1, %v1472_v59, %v1468_v44 }
 0x2e8   :  { %v3426_v35 = vpop.permute.xlu0 %1355  ;;  %v1482_v41 = vsel %vm911_vm1, %v1481_v7, %v1477_v13 }
 0x2e9   :  { %v3424_v39 = vpop.permute.xlu1 %1358  ;;  %v1486_v58 = vrot.slane %v3426_v35, %v3101_v31 }
 0x2ec   :  { %v3432_v25 = vpop.permute.xlu0 %1361 }
 0x2ed   :  { %v3428_v57 = vpop.permute.xlu1 %1364  ;;  %v1495_v59 = vrot.slane %v3432_v25, %v3101_v31 }
 0x2f0   :  { %v3436_v17 = vpop.permute.xlu0 %1370 }
 0x2f1   :  { %v3430_v53 = vpop.permute.xlu1 %1367 }
 0x2f4   :  { %v3438_v52 = vpop.permute.xlu0 %1376 }
 0x2f5   :  { %v3434_v10 = vpop.permute.xlu1 %1373 }
 0x2f8   :  { %v1290_v49 = vpop.permute.xlu0 %1289 }
 0x2f9   :  { %v1293_v18 = vpop.permute.xlu1 %1292  ;;  %v1387_v42 = vrot.slane %v1290_v49, %v3101_v31 }
 0x2fa   :  { %v1391_v11 = vrot.slane %v1293_v18, %v3098_v29 }
 0x2fc   :  { %v1317_v3 = vpop.permute.xlu0 %1316  ;;  %v1392_v35 = vsel %vm911_vm1, %v1391_v11, %v1387_v42 }
 0x2fd   :  { %v1296_v30 = vpop.permute.xlu1 %1295  ;;  %v1427_v7 = vrot.slane %v1317_v3, %v3098_v29 }
 0x2fe   :  { %v1396_v16 = vrot.slane %v1296_v30, %v3101_v31 }
 0x300   :  { %v1323_v2 = vpop.permute.xlu0 %1322 }
 0x301   :  { %v1299_v24 = vpop.permute.xlu1 %1298 }
 0x302   :  { %v1400_v23 = vrot.slane %v1299_v24, %v3098_v29 }
 0x304   :  { %v1329_v54 = vpop.permute.xlu0 %1328  ;;  %v1401_v12 = vsel %vm911_vm1, %v1400_v23, %v1396_v16  ;;  %v1436_v23 = vrot.slane %v1323_v2, %v3098_v29 }
 0x305   :  { %v1302_v46 = vpop.permute.xlu1 %1301  ;;  %v1445_v25 = vrot.slane %v1329_v54, %v3098_v29 }
 0x306   :  { %v1405_v6 = vrot.slane %v1302_v46, %v3101_v31  ;;  %v1528_v46 = vsel %vm1048_vm2, %v1401_v12, %v1392_v35 }
 0x308   :  { %v1335_v44 = vpop.permute.xlu0 %1334 }
 0x309   :  { %v1305_v5 = vpop.permute.xlu1 %1304  ;;  %v1454_v16 = vrot.slane %v1335_v44, %v3098_v29 }
 0x30a   :  { %v1409_v48 = vrot.slane %v1305_v5, %v3098_v29 }
 0x30c   :  { %v1410_v13 = vsel %vm911_vm1, %v1409_v48, %v1405_v6  ;;  %v1504_v48 = vrot.slane %v3430_v53, %v3101_v31  ;;  %v1508_v6 = vrot.slane %v3436_v17, %v3098_v29  ;;  %v1383_v12 = vpop.permute.xlu0 %1382 }
 0x30d   :  { %v1308_v33 = vpop.permute.xlu1 %1307  ;;  %v1529_v2 = vsel %vm1050_vm3, %v1410_v13, %v1528_v46 }
 0x30e   :  { %v1414_v18 = vrot.slane %v1308_v33, %v3101_v31  ;;  %v1513_v33 = vrot.slane %v3434_v10, %v3101_v31 }
 0x311   :  { %v1311_v50 = vpop.permute.xlu1 %1310 }
 0x312   :  { %v1418_v34 = vrot.slane %v1311_v50, %v3098_v29  ;;  %v1490_v50 = vrot.slane %v3424_v39, %v3098_v29  ;;  %v1499_v39 = vrot.slane %v3428_v57, %v3098_v29  ;;  %v1517_v57 = vrot.slane %v3438_v52, %v3098_v29 }
 0x314   :  { %v1419_v30 = vsel %vm911_vm1, %v1418_v34, %v1414_v18  ;;  %v1491_v53 = vsel %vm911_vm1, %v1490_v50, %v1486_v58  ;;  %v1500_v10 = vsel %vm911_vm1, %v1499_v39, %v1495_v59  ;;  %v1518_v13 = vsel %vm911_vm1, %v1517_v57, %v1513_v33 }
 0x315   :  { %v1314_v45 = vpop.permute.xlu1 %1313  ;;  %v1530_v54 = vsel %vm1052_vm4, %v1419_v30, %v1529_v2  ;;  %v1526_v59 = vrot.slane %v1383_v12, %v3098_v29 }
 0x316   :  { %v1423_v24 = vrot.slane %v1314_v45, %v3101_v31 }
 0x318   :  { %v1428_v5 = vsel %vm911_vm1, %v1427_v7, %v1423_v24  ;;  %v1535_v24 = vsel %vm1048_vm2, %v1473_v19, %v1464_v32 }
 0x319   :  { %v1320_v15 = vpop.permute.xlu1 %1319  ;;  %v1531_v17 = vsel %vm1054_vm5, %v1428_v5, %v1530_v54  ;;  %v1536_v18 = vsel %vm1050_vm3, %v1482_v41, %v1535_v24 }
 0x31a   :  { %v1432_v49 = vrot.slane %v1320_v15, %v3101_v31  ;;  %v1537_v50 = vsel %vm1052_vm4, %v1491_v53, %v1536_v18 }
 0x31b   :  { %v1538_v19 = vsel %vm1054_vm5, %v1500_v10, %v1537_v50 }
 0x31c   :  { %v1437_v3 = vsel %vm911_vm1, %v1436_v23, %v1432_v49  ;;  %v1509_v49 = vsel %vm911_vm1, %v1508_v6, %v1504_v48 }
 0x31d   :  { %v1326_v45 = vpop.permute.xlu1 %1325  ;;  %v1532_v52 = vsel %vm1056_vm6, %v1437_v3, %v1531_v17  ;;  %v1539_v35 = vsel %vm1056_vm6, %v1509_v49, %v1538_v19 }
 0x31e   :  { %v1441_v15 = vrot.slane %v1326_v45, %v3101_v31  ;;  %v1540_v30 = vsel %vm1058_vm8, %v1518_v13, %v1539_v35  ;;  %v3904_v13 = vld [vmem:[#allocation14_spill] sm:$0xff]  ;;  %v3909_v35 = vld [vmem:[#allocation9_spill] sm:$0xff] }
 0x320   :  { %v1446_v11 = vsel %vm911_vm1, %v1445_v25, %v1441_v15 }
 0x321   :  { %v1332_v42 = vpop.permute.xlu1 %1331  ;;  %v1533_v58 = vsel %vm1058_vm8, %v1446_v11, %v1532_v52 }
 0x322   :  { %v1450_v34 = vrot.slane %v1332_v42, %v3101_v31 }
 0x324   :  { %v1455_v7 = vsel %vm911_vm1, %v1454_v16, %v1450_v34 }
 0x325   :  { %v1380_v44 = vpop.permute.xlu1 %1379  ;;  %v1534_v32 = vsel %vm1060_vm7, %v1455_v7, %v1533_v58 }
 0x326   :  { %v1522_v45 = vrot.slane %v1380_v44, %v3101_v31  ;;  %v1544_v41 = vsel %vm1071_vm9, %v1534_v32, 0.0  ;;  %v3905_v44 = vld [vmem:[#allocation12_spill] sm:$0xff] }
 0x327   :  { %1545 = vadd.xlane.f32.xlu1 %v1544_v41  ;;  %v3906_v32 = vld [vmem:[#allocation8_spill] sm:$0xff] }
 0x328   :  { %v1527_v23 = vsel %vm911_vm1, %v1526_v59, %v1522_v45  ;;  %v3907_v59 = vld [vmem:[#allocation17_spill] sm:$0xff]  ;;  %v3908_v45 = vld [vmem:[#allocation16_spill] sm:$0xff] }
 0x329   :  { %v1541_v15 = vsel %vm1060_vm7, %v1527_v23, %v1540_v30  ;;  %v3910_v30 = vld [vmem:[#allocation18_spill] sm:$0xff] }
 0x32a   :  { %v1547_v39 = vsel %vm1071_vm9, %v1541_v15, 0.0 }
 0x32b   :  { %1548 = vadd.xlane.f32.xlu0 %v1547_v39 }
 0x3b0   :  { %v1546_v34 = vpop.xlane.xlu1 %1545 }
 0x3b1   :  { %v1555_v24 = vrot.slane %v1546_v34, %v2850_v21  ;;  %v1559_v12 = vrot.slane %v1546_v34, %v3224_v36 }
 0x3b4   :  { %v3512_v46 = vpop.xlane.xlu0 %1548 }
 0x3b5   :  { %v1587_v25 = vrot.slane %v3512_v46, %v2850_v21  ;;  %v1591_v5 = vrot.slane %v3512_v46, %v3224_v36  ;;  %v1595_v48 = vrot.slane %v3512_v46, %v3231_v51  ;;  %v1599_v6 = vrot.slane %v3512_v46, %v3238_v62 }
 0x3b6   :  { %v1603_v2 = vrot.slane %v3512_v46, %v3245_v20  ;;  %v1607_v54 = vrot.slane %v3512_v46, %v3252_v14  ;;  %v1611_v16 = vrot.slane %v3512_v46, %v3259_v0  ;;  %v1563_v21 = vrot.slane %v1546_v34, %v3231_v51 }
 0x3b7   :  { %2470 = vrcp.f32 %v1587_v25  ;;  %v1567_v36 = vrot.slane %v1546_v34, %v3238_v62  ;;  %v1571_v51 = vrot.slane %v1546_v34, %v3245_v20  ;;  %v1575_v62 = vrot.slane %v1546_v34, %v3252_v14  ;;  %v3911_v25 = vld [vmem:[#allocation10_spill] sm:$0xff] }
 0x3b8   :  { %2472 = vrcp.f32 %v1591_v5  ;;  %v1579_v20 = vrot.slane %v1546_v34, %v3259_v0  ;;  %v1583_v14 = vrot.slane %v1546_v34, %v3906_v32  ;;  %v1615_v0 = vrot.slane %v3512_v46, %v3906_v32  ;;  %v3917_v34 = vld [vmem:[#allocation15_spill] sm:$0xff] }
 0x3b9   :  { %2474 = vrcp.f32 %v1595_v48  ;;  %v3912_v48 = vld [vmem:[#allocation19_spill] sm:$0xff] }
 0x3ba   :  { %2476 = vrcp.f32 %v1599_v6 }
 0x3bb   :  { %2478 = vrcp.f32 %v1603_v2 }
 0x3bc   :  { %2480 = vrcp.f32 %v1607_v54 }
 0x3bd   :  { %2482 = vrcp.f32 %v1611_v16 }
 0x3be   :  { %2484 = vrcp.f32 %v1555_v24 }
 0x3bf   :  { %2486 = vrcp.f32 %v1559_v12 }
 0x3c0   :  { %2488 = vrcp.f32 %v1563_v21 }
 0x3c1   :  { %2490 = vrcp.f32 %v1567_v36  ;;  %v2504_v36 = vld [vmem:[%s3864_s0 + $0x98] sm:$0xff] }
 0x3c2   :  { %2492 = vrcp.f32 %v1571_v51 }
 0x3c3   :  { %2494 = vrcp.f32 %v1575_v62 }
 0x3c4   :  { %v2471_v3 = vpop.eup %2470  ;;  %2496 = vrcp.f32 %v1579_v20 }
 0x3c5   :  { %v1658_v33 = vmul.f32 %v2471_v3, %v3269_v47  ;;  %v1657_v57 = vmul.f32 %v2471_v3, %v3264_v61  ;;  %v2473_v11 = vpop.eup %2472  ;;  %2498 = vrcp.f32 %v1583_v14  ;;  %v3913_v3 = vld [vmem:[#allocation11_spill] sm:$0xff] }
 0x3c6   :  { %v1661_v42 = vmul.f32 %v2473_v11, %v3279_v38  ;;  %v1660_v53 = vmul.f32 %v2473_v11, %v3276_v37  ;;  %v2475_v17 = vpop.eup %2474  ;;  %2500 = vrcp.f32 %v1615_v0  ;;  %v3915_v11 = vld [vmem:[#allocation13_spill] sm:$0xff]  ;;  %v2508_v14 = vld [vmem:[%s3864_s0 + $0xb8] sm:$0xff] }
 0x3c7   :  { %1767 = vperm.xlu0 %2404, %v1658_v33   ;;  %1762 = vperm.xlu1 %2405, %v1657_v57   ;;  %v1664_v61 = vmul.f32 %v2475_v17, %v3293_v8  ;;  %v1663_v47 = vmul.f32 %v2475_v17, %v3288_v26  ;;  %v2477_v10 = vpop.eup %2476  ;;  %v3914_v33 = vld [vmem:[#allocation20_spill] sm:$0xff] }
 0x3c8   :  { %v1667_v37 = vmul.f32 %v2477_v10, %v3306_v43  ;;  %v1666_v38 = vmul.f32 %v2477_v10, %v3303_v56  ;;  %v2479_v52 = vpop.eup %2478 }
 0x3c9   :  { %v1670_v8 = vmul.f32 %v2479_v52, %v3324_v27  ;;  %v1669_v26 = vmul.f32 %v2479_v52, %v3319_v1  ;;  %v2481_v18 = vpop.eup %2480  ;;  %v2503_v52 = vld [vmem:[%s3864_s0 + $0x80] sm:$0xff] }
 0x3ca   :  { %v1673_v43 = vmul.f32 %v2481_v18, %v3334_v9  ;;  %v1672_v56 = vmul.f32 %v2481_v18, %v3337_v22  ;;  %v2483_v49 = vpop.eup %2482 }
 0x3cb   :  { %1777 = vperm.xlu0 %2404, %v1661_v42   ;;  %1772 = vperm.xlu1 %2405, %v1660_v53   ;;  %v1676_v27 = vmul.f32 %v2483_v49, %v3347_v60  ;;  %v1675_v1 = vmul.f32 %v2483_v49, %v3352_v40  ;;  %v2485_v7 = vpop.eup %2484  ;;  %v3916_v53 = vld [vmem:[#allocation21_spill] sm:$0xff] }
 0x3cc   :  { %v1633_v9 = vmul.f32 %v2485_v7, %v3358_v28  ;;  %v1634_v22 = vmul.f32 %v2485_v7, %v3361_v55  ;;  %v2487_v58 = vpop.eup %2486 }
 0x3cd   :  { %v1637_v60 = vmul.f32 %v2487_v58, %v3376_v63  ;;  %v1636_v40 = vmul.f32 %v2487_v58, %v3368_v4  ;;  %v2489_v50 = vpop.eup %2488  ;;  %v2506_v58 = vld [vmem:[%s3864_s0 + $0xa8] sm:$0xff] }
 0x3ce   :  { %v1640_v28 = vmul.f32 %v2489_v50, %v3904_v13  ;;  %v1639_v55 = vmul.f32 %v2489_v50, %v3905_v44  ;;  %v2491_v19 = vpop.eup %2490 }
 0x3cf   :  { %1787 = vperm.xlu0 %2404, %v1664_v61   ;;  %1782 = vperm.xlu1 %2405, %v1663_v47   ;;  %v1643_v63 = vmul.f32 %v2491_v19, %v3907_v59  ;;  %v1642_v4 = vmul.f32 %v2491_v19, %v3908_v45  ;;  %v2493_v41 = vpop.eup %2492  ;;  %v3918_v47 = vld [vmem:[#allocation22_spill] sm:$0xff] }
 0x3d0   :  { %v1646_v23 = vmul.f32 %v2493_v41, %v3909_v35  ;;  %v1645_v15 = vmul.f32 %v2493_v41, %v3910_v30  ;;  %v2495_v39 = vpop.eup %2494  ;;  %v2509_v59 = vld [vmem:[%s3864_s0 + $0xb0] sm:$0xff] }
 0x3d1   :  { %v1649_v5 = vmul.f32 %v2495_v39, %v3911_v25  ;;  %v1648_v6 = vmul.f32 %v2495_v39, %v3912_v48  ;;  %v2497_v2 = vpop.eup %2496 }
 0x3d2   :  { %v1652_v46 = vmul.f32 %v2497_v2, %v3913_v3  ;;  %v1651_v57 = vmul.f32 %v2497_v2, %v3914_v33  ;;  %v2499_v54 = vpop.eup %2498  ;;  %v2510_v3 = vld [vmem:[%s3864_s0 + $0xc8] sm:$0xff]  ;;  %v2511_v33 = vld [vmem:[%s3864_s0 + $0xc0] sm:$0xff] }
 0x3d3   :  { %1797 = vperm.xlu0 %2404, %v1667_v37   ;;  %1792 = vperm.xlu1 %2405, %v1666_v38   ;;  %v1655_v42 = vmul.f32 %v2499_v54, %v3915_v11  ;;  %v1654_v16 = vmul.f32 %v2499_v54, %v3916_v53  ;;  %v2501_v17 = vpop.eup %2500  ;;  %v2502_v38 = vld [vmem:[%s3864_s0 + $0x88] sm:$0xff] }
 0x3d4   :  { %v1679_v61 = vmul.f32 %v2501_v17, %v3917_v34  ;;  %v1678_v24 = vmul.f32 %v2501_v17, %v3918_v47 }
 0x3d7   :  { %1807 = vperm.xlu0 %2404, %v1670_v8   ;;  %1802 = vperm.xlu1 %2405, %v1669_v26  }
 0x3db   :  { %1817 = vperm.xlu0 %2404, %v1673_v43   ;;  %1812 = vperm.xlu1 %2405, %v1672_v56  }
 0x3df   :  { %1827 = vperm.xlu0 %2404, %v1676_v27   ;;  %1822 = vperm.xlu1 %2405, %v1675_v1   ;;  %v2505_v27 = vld [vmem:[%s3864_s0 + $0x90] sm:$0xff] }
 0x3e3   :  { %1682 = vperm.xlu0 %2404, %v1633_v9   ;;  %1687 = vperm.xlu1 %2405, %v1634_v22  }
 0x3e7   :  { %1697 = vperm.xlu0 %2404, %v1637_v60   ;;  %1692 = vperm.xlu1 %2405, %v1636_v40   ;;  %v2507_v40 = vld [vmem:[%s3864_s0 + $0xa0] sm:$0xff] }
 0x3eb   :  { %1707 = vperm.xlu0 %2404, %v1640_v28   ;;  %1702 = vperm.xlu1 %2405, %v1639_v55  }
 0x3ef   :  { %1717 = vperm.xlu0 %2404, %v1643_v63   ;;  %1712 = vperm.xlu1 %2405, %v1642_v4  }
 0x3f3   :  { %1727 = vperm.xlu0 %2404, %v1646_v23   ;;  %1722 = vperm.xlu1 %2405, %v1645_v15  }
 0x3f7   :  { %1737 = vperm.xlu0 %2404, %v1649_v5   ;;  %1732 = vperm.xlu1 %2405, %v1648_v6  }
 0x3fb   :  { %1747 = vperm.xlu0 %2404, %v1652_v46   ;;  %1742 = vperm.xlu1 %2405, %v1651_v57  }
 0x3ff   :  { %1757 = vperm.xlu0 %2404, %v1655_v42   ;;  %1752 = vperm.xlu1 %2405, %v1654_v16  }
 0x403   :  { %1837 = vperm.xlu0 %2404, %v1679_v61   ;;  %1832 = vperm.xlu1 %2405, %v1678_v24  }
 0x442   :  { %v1768_v10 = vpop.permute.xlu0 %1767  ;;  %v1763_v37 = vpop.permute.xlu1 %1762 }
 0x443   :  { %v1857_v12 = vmul.f32 %v2502_v38, %v1768_v10  ;;  %v1856_v8 = vmul.f32 %v2503_v52, %v1763_v37  ;;  %v2129_v45 = vrot.slane %v1768_v10, %v3098_v29  ;;  %v2125_v0 = vrot.slane %v1763_v37, %v3101_v31  ;;  %v2512_v37 = vld [vmem:[%s3864_s0 + $0xd8] sm:$0xff] }
 0x445   :  { %v1945_v26 = vsel %vm75_vm0, %v1857_v12, 0.0  ;;  %v1944_v21 = vsel %vm75_vm0, %v1856_v8, 0.0  ;;  %v2130_v16 = vsel %vm911_vm1, %v2129_v45, %v2125_v0  ;;  %v2513_v12 = vld [vmem:[%s3864_s0 + $0xd0] sm:$0xff] }
 0x446   :  { %v1778_v18 = vpop.permute.xlu0 %1777  ;;  %v1773_v43 = vpop.permute.xlu1 %1772  ;;  %v1946_v56 = vadd.f32 %v1945_v26, %v1944_v21 }
 0x447   :  { %v1859_v49 = vmul.f32 %v2504_v36, %v1778_v18  ;;  %v1858_v1 = vmul.f32 %v2505_v27, %v1773_v43  ;;  %v2138_v30 = vrot.slane %v1778_v18, %v3098_v29  ;;  %v2134_v15 = vrot.slane %v1773_v43, %v3101_v31 }
 0x448   :  { %v1947_v62 = vrot.slane %v1946_v56, 4 }
 0x449   :  { %v1954_v51 = vsel %vm75_vm0, %v1859_v49, 0.0  ;;  %v1953_v7 = vsel %vm75_vm0, %v1858_v1, 0.0  ;;  %v2139_v17 = vsel %vm911_vm1, %v2138_v30, %v2134_v15 }
 0x44a   :  { %v1788_v9 = vpop.permute.xlu0 %1787  ;;  %v1783_v22 = vpop.permute.xlu1 %1782  ;;  %v1955_v50 = vadd.f32 %v1954_v51, %v1953_v7  ;;  %v1948_v32 = vadd.f32 %v1947_v62, %v1946_v56  ;;  %v2201_v43 = vsel %vm1048_vm2, %v2139_v17, %v2130_v16  ;;  %v2515_v62 = vld [vmem:[%s3864_s0 + $0xe0] sm:$0xff]  ;;  %v2518_v16 = vld [vmem:[%s3864_s0 + $0x18] sm:$0xff] }
 0x44b   :  { %v1861_v60 = vmul.f32 %v2506_v58, %v1788_v9  ;;  %v1860_v20 = vmul.f32 %v2507_v40, %v1783_v22  ;;  %v2147_v39 = vrot.slane %v1788_v9, %v3098_v29  ;;  %v2143_v2 = vrot.slane %v1783_v22, %v3101_v31  ;;  %v2514_v9 = vld [vmem:[%s3864_s0 + $0xe8] sm:$0xff] }
 0x44c   :  { %v1956_v4 = vrot.slane %v1955_v50, 4  ;;  %v1949_v6 = vrot.slane %v1948_v32, 2 }
 0x44d   :  { %v1963_v13 = vsel %vm75_vm0, %v1861_v60, 0.0  ;;  %v1962_v28 = vsel %vm75_vm0, %v1860_v20, 0.0  ;;  %v2148_v10 = vsel %vm911_vm1, %v2147_v39, %v2143_v2 }
 0x44e   :  { %v1798_v44 = vpop.permute.xlu0 %1797  ;;  %v1793_v55 = vpop.permute.xlu1 %1792  ;;  %v1964_v41 = vadd.f32 %v1963_v13, %v1962_v28  ;;  %v1957_v54 = vadd.f32 %v1956_v4, %v1955_v50  ;;  %v1950_v24 = vadd.f32 %v1949_v6, %v1948_v32  ;;  %v2202_v36 = vsel %vm1050_vm3, %v2148_v10, %v2201_v43 }
 0x44f   :  { %v1863_v19 = vmul.f32 %v2508_v14, %v1798_v44  ;;  %v1862_v63 = vmul.f32 %v2509_v59, %v1793_v55  ;;  %v2156_v26 = vrot.slane %v1798_v44, %v3098_v29  ;;  %v2152_v21 = vrot.slane %v1793_v55, %v3101_v31 }
 0x450   :  { %v1965_v11 = vrot.slane %v1964_v41, 4  ;;  %v1958_v8 = vrot.slane %v1957_v54, 2  ;;  %v1951_v60 = vrot.slane %v1950_v24, 1 }
 0x451   :  { %v1972_v35 = vsel %vm75_vm0, %v1863_v19, 0.0  ;;  %v1971_v23 = vsel %vm75_vm0, %v1862_v63, 0.0  ;;  %v2157_v20 = vsel %vm911_vm1, %v2156_v26, %v2152_v21 }
 0x452   :  { %v1973_v25 = vadd.f32 %v1972_v35, %v1971_v23  ;;  %v3607_v5 = vpop.permute.xlu0 %1807  ;;  %v3609_v48 = vpop.permute.xlu1 %1802  ;;  %v1966_v56 = vadd.f32 %v1965_v11, %v1964_v41  ;;  %v3649_v40 = vadd.f32 %v1958_v8, %v1957_v54  ;;  %v2516_v41 = vld [vmem:[%s3864_s0] sm:$0xff]  ;;  %v2517_v23 = vld [vmem:[%s3864_s0 + $0x8] sm:$0xff]  ;;  %v3672_v15 = vadd.f32 %v1951_v60, %v1950_v24 }
 0x453   :  { %v1865_v46 = vmul.f32 %v2510_v3, %v3607_v5  ;;  %v1864_v57 = vmul.f32 %v2511_v33, %v3609_v48  ;;  %v2165_v28 = vrot.slane %v3607_v5, %v3098_v29  ;;  %v2161_v14 = vrot.slane %v3609_v48, %v3101_v31 }
 0x454   :  { %v1974_v34 = vrot.slane %v1973_v25, 4  ;;  %v1967_v13 = vrot.slane %v1966_v56, 2  ;;  %v2203_v39 = vsel %vm1052_vm4, %v2157_v20, %v2202_v36  ;;  %v1960_v5 = vrot.slane %v3649_v40, 1 }
 0x455   :  { %v1981_v42 = vsel %vm75_vm0, %v1865_v46, 0.0  ;;  %v1980_v53 = vsel %vm75_vm0, %v1864_v57, 0.0  ;;  %v2166_v46 = vsel %vm911_vm1, %v2165_v28, %v2161_v14 }
 0x456   :  { %v1818_v61 = vpop.permute.xlu0 %1817  ;;  %v1813_v47 = vpop.permute.xlu1 %1812  ;;  %v1982_v18 = vadd.f32 %v1981_v42, %v1980_v53  ;;  %v1975_v49 = vadd.f32 %v1974_v34, %v1973_v25  ;;  %v3676_v48 = vadd.f32 %v1967_v13, %v1966_v56  ;;  %v2519_v34 = vld [vmem:[%s3864_s0 + $0x10] sm:$0xff] }
 0x457   :  { %v1867_v38 = vmul.f32 %v2512_v37, %v1818_v61  ;;  %v1866_v52 = vmul.f32 %v2513_v12, %v1813_v47  ;;  %v2174_v19 = vrot.slane %v1818_v61, %v3098_v29  ;;  %v2170_v4 = vrot.slane %v1813_v47, %v3101_v31 }
 0x458   :  { %v1983_v50 = vrot.slane %v1982_v18, 4  ;;  %v1976_v32 = vrot.slane %v1975_v49, 2  ;;  %v2204_v12 = vsel %vm1054_vm5, %v2166_v46, %v2203_v39 }
 0x459   :  { %v1990_v51 = vsel %vm75_vm0, %v1867_v38, 0.0  ;;  %v1989_v7 = vsel %vm75_vm0, %v1866_v52, 0.0  ;;  %v2175_v42 = vsel %vm911_vm1, %v2174_v19, %v2170_v4  ;;  %v1969_v38 = vrot.slane %v3676_v48, 1 }
 0x45a   :  { %v3635_v27 = vpop.permute.xlu0 %1827  ;;  %v3637_v1 = vpop.permute.xlu1 %1822  ;;  %v1991_v59 = vadd.f32 %v1990_v51, %v1989_v7  ;;  %v1984_v25 = vadd.f32 %v1983_v50, %v1982_v18  ;;  %v3680_v3 = vadd.f32 %v1976_v32, %v1975_v49  ;;  %v2205_v49 = vsel %vm1056_vm6, %v2175_v42, %v2204_v12  ;;  %v2521_v7 = vld [vmem:[%s3864_s0 + $0x20] sm:$0xff] }
 0x45b   :  { %v1869_v22 = vmul.f32 %v2514_v9, %v3635_v27  ;;  %v1868_v58 = vmul.f32 %v2515_v62, %v3637_v1  ;;  %v2183_v24 = vrot.slane %v3635_v27, %v3098_v29  ;;  %v2179_v10 = vrot.slane %v3637_v1, %v3101_v31  ;;  %v2520_v1 = vld [vmem:[%s3864_s0 + $0x28] sm:$0xff] }
 0x45c   :  { %v1992_v33 = vrot.slane %v1991_v59, 4  ;;  %v1985_v47 = vrot.slane %v1984_v25, 2  ;;  %v1978_v26 = vrot.slane %v3680_v3, 1 }
 0x45d   :  { %v1999_v44 = vsel %vm75_vm0, %v1869_v22, 0.0  ;;  %v1998_v55 = vsel %vm75_vm0, %v1868_v58, 0.0  ;;  %v2184_v62 = vsel %vm911_vm1, %v2183_v24, %v2179_v10  ;;  %v2525_v24 = vld [vmem:[%s3864_s0 + $0x40] sm:$0xff] }
 0x45e   :  { %v3659_v63 = vpop.permute.xlu0 %1682  ;;  %v3661_v45 = vpop.permute.xlu1 %1687  ;;  %v2000_v0 = vadd.f32 %v1999_v44, %v1998_v55  ;;  %v1993_v21 = vadd.f32 %v1992_v33, %v1991_v59  ;;  %v3706_v22 = vadd.f32 %v1985_v47, %v1984_v25 }
 0x45f   :  { %v1840_v35 = vmul.f32 %v2516_v41, %v3659_v63  ;;  %v1841_v30 = vmul.f32 %v2517_v23, %v3661_v45  ;;  %v2053_v55 = vrot.slane %v3659_v63, %v3101_v31  ;;  %v2522_v41 = vld [vmem:[%s3864_s0 + $0x38] sm:$0xff]  ;;  %v2523_v23 = vld [vmem:[%s3864_s0 + $0x30] sm:$0xff]  ;;  %v3724_v63 = vsel %vm1058_vm8, %v2184_v62, %v2205_v49 }
 0x460   :  { %v2001_v53 = vrot.slane %v2000_v0, 4  ;;  %v1994_v44 = vrot.slane %v1993_v21, 2 }
 0x461   :  { %v1872_v6 = vsel %vm75_vm0, %v1840_v35, 0.0  ;;  %v1873_v2 = vsel %vm75_vm0, %v1841_v30, 0.0 }
 0x462   :  { %v1874_v57 = vadd.f32 %v1873_v2, %v1872_v6  ;;  %v1698_v54 = vpop.permute.xlu0 %1697  ;;  %v1693_v11 = vpop.permute.xlu1 %1692  ;;  %v2002_v27 = vadd.f32 %v2001_v53, %v2000_v0  ;;  %v2057_v0 = vrot.slane %v3661_v45, %v3098_v29 }
 0x463   :  { %v1843_v17 = vmul.f32 %v2518_v16, %v1698_v54  ;;  %v1842_v61 = vmul.f32 %v2519_v34, %v1693_v11  ;;  %v2066_v58 = vrot.slane %v1698_v54, %v3098_v29  ;;  %v2062_v50 = vrot.slane %v1693_v11, %v3101_v31 }
 0x464   :  { %v1875_v37 = vrot.slane %v1874_v57, 4  ;;  %v2003_v4 = vrot.slane %v2002_v27, 2  ;;  %v2058_v34 = vsel %vm911_vm1, %v2057_v0, %v2053_v55 }
 0x465   :  { %v1882_v52 = vsel %vm75_vm0, %v1843_v17, 0.0  ;;  %v1881_v8 = vsel %vm75_vm0, %v1842_v61, 0.0  ;;  %v2067_v45 = vsel %vm911_vm1, %v2066_v58, %v2062_v50  ;;  %v2524_v61 = vld [vmem:[%s3864_s0 + $0x48] sm:$0xff]  ;;  %v2526_v58 = vld [vmem:[%s3864_s0 + $0x58] sm:$0xff] }
 0x466   :  { %v1876_v18 = vadd.f32 %v1875_v37, %v1874_v57  ;;  %v1883_v43 = vadd.f32 %v1882_v52, %v1881_v8  ;;  %v1708_v56 = vpop.permute.xlu0 %1707  ;;  %v1703_v36 = vpop.permute.xlu1 %1702  ;;  %v3733_v57 = vadd.f32 %v1994_v44, %v1993_v21  ;;  %v3735_v17 = vadd.f32 %v2003_v4, %v2002_v27 }
 0x467   :  { %v1845_v51 = vmul.f32 %v2520_v1, %v1708_v56  ;;  %v1844_v9 = vmul.f32 %v2521_v7, %v1703_v36  ;;  %v2075_v39 = vrot.slane %v1708_v56, %v3098_v29  ;;  %v2071_v6 = vrot.slane %v1703_v36, %v3101_v31 }
 0x468   :  { %v1884_v60 = vrot.slane %v1883_v43, 4  ;;  %v1877_v20 = vrot.slane %v1876_v18, 2  ;;  %v2194_v37 = vsel %vm1048_vm2, %v2067_v45, %v2058_v34 }
 0x469   :  { %v1891_v13 = vsel %vm75_vm0, %v1845_v51, 0.0  ;;  %v1890_v28 = vsel %vm75_vm0, %v1844_v9, 0.0  ;;  %v2076_v12 = vsel %vm911_vm1, %v2075_v39, %v2071_v6 }
 0x46a   :  { %v1885_v32 = vadd.f32 %v1884_v60, %v1883_v43  ;;  %v1892_v14 = vadd.f32 %v1891_v13, %v1890_v28  ;;  %v1718_v19 = vpop.permute.xlu0 %1717  ;;  %v1713_v59 = vpop.permute.xlu1 %1712  ;;  %v3728_v2 = vadd.f32 %v1877_v20, %v1876_v18  ;;  %v2527_v20 = vld [vmem:[%s3864_s0 + $0x50] sm:$0xff]  ;;  %v2195_v13 = vsel %vm1050_vm3, %v2076_v12, %v2194_v37 }
 0x46b   :  { %v1847_v35 = vmul.f32 %v2522_v41, %v1718_v19  ;;  %v1846_v30 = vmul.f32 %v2523_v23, %v1713_v59  ;;  %v2084_v52 = vrot.slane %v1718_v19, %v3098_v29  ;;  %v2080_v18 = vrot.slane %v1713_v59, %v3101_v31 }
 0x46c   :  { %v1893_v25 = vrot.slane %v1892_v14, 4  ;;  %v1886_v54 = vrot.slane %v1885_v32, 2  ;;  %v1879_v21 = vrot.slane %v3728_v2, 1 }
 0x46d   :  { %v1900_v46 = vsel %vm75_vm0, %v1847_v35, 0.0  ;;  %v1899_v33 = vsel %vm75_vm0, %v1846_v30, 0.0 }
 0x46e   :  { %v1894_v11 = vadd.f32 %v1893_v25, %v1892_v14  ;;  %v1901_v42 = vadd.f32 %v1900_v46, %v1899_v33  ;;  %v1728_v53 = vpop.permute.xlu0 %1727  ;;  %v1723_v16 = vpop.permute.xlu1 %1722  ;;  %v3751_v36 = vadd.f32 %v1886_v54, %v1885_v32  ;;  %v2085_v32 = vsel %vm911_vm1, %v2084_v52, %v2080_v18  ;;  %v2528_v25 = vld [vmem:[%s3864_s0 + $0x68] sm:$0xff]  ;;  %v2529_v46 = vld [vmem:[%s3864_s0 + $0x60] sm:$0xff] }
 0x46f   :  { %v1849_v47 = vmul.f32 %v2524_v61, %v1728_v53  ;;  %v1848_v10 = vmul.f32 %v2525_v24, %v1723_v16  ;;  %v2093_v9 = vrot.slane %v1728_v53, %v3098_v29  ;;  %v2089_v62 = vrot.slane %v1723_v16, %v3101_v31 }
 0x470   :  { %v1902_v8 = vrot.slane %v1901_v42, 4  ;;  %v1895_v49 = vrot.slane %v1894_v11, 2  ;;  %v1888_v4 = vrot.slane %v3751_v36, 1 }
 0x471   :  { %v1909_v43 = vsel %vm75_vm0, %v1849_v47, 0.0  ;;  %v1908_v56 = vsel %vm75_vm0, %v1848_v10, 0.0  ;;  %v2094_v39 = vsel %vm911_vm1, %v2093_v9, %v2089_v62 }
 0x472   :  { %v1903_v27 = vadd.f32 %v1902_v8, %v1901_v42  ;;  %v1910_v1 = vadd.f32 %v1909_v43, %v1908_v56  ;;  %v1738_v51 = vpop.permute.xlu0 %1737  ;;  %v1733_v7 = vpop.permute.xlu1 %1732  ;;  %v3768_v0 = vadd.f32 %v1895_v49, %v1894_v11  ;;  %v2196_v11 = vsel %vm1052_vm4, %v2085_v32, %v2195_v13  ;;  %v2530_v43 = vld [vmem:[%s3864_s0 + $0x78] sm:$0xff] }
 0x473   :  { %v1851_v60 = vmul.f32 %v2526_v58, %v1738_v51  ;;  %v1850_v50 = vmul.f32 %v2527_v20, %v1733_v7  ;;  %v2102_v55 = vrot.slane %v1738_v51, %v3098_v29  ;;  %v2098_v59 = vrot.slane %v1733_v7, %v3101_v31 }
 0x474   :  { %v1904_v28 = vrot.slane %v1903_v27, 2  ;;  %v1911_v44 = vrot.slane %v1910_v1, 4  ;;  %v1897_v24 = vrot.slane %v3768_v0, 1  ;;  %v2197_v10 = vsel %vm1054_vm5, %v2094_v39, %v2196_v11 }
 0x475   :  { %v1918_v14 = vsel %vm75_vm0, %v1851_v60, 0.0  ;;  %v1917_v19 = vsel %vm75_vm0, %v1850_v50, 0.0  ;;  %v2103_v53 = vsel %vm911_vm1, %v2102_v55, %v2098_v59  ;;  %v2532_v59 = vld [vmem:[%s3864_s0 + $0xf8] sm:$0xff]  ;;  %v1889_v39 = vadd.f32 %v1888_v4, %v3751_v36 }
 0x476   :  { %v1912_v41 = vadd.f32 %v1911_v44, %v1910_v1  ;;  %v1919_v35 = vadd.f32 %v1918_v14, %v1917_v19  ;;  %v1748_v23 = vpop.permute.xlu0 %1747  ;;  %v1743_v30 = vpop.permute.xlu1 %1742  ;;  %v1905_v54 = vadd.f32 %v1904_v28, %v1903_v27  ;;  %v2531_v27 = vld [vmem:[%s3864_s0 + $0x70] sm:$0xff]  ;;  %v2198_v9 = vsel %vm1056_vm6, %v2103_v53, %v2197_v10 }
 0x477   :  { %v1853_v6 = vmul.f32 %v2528_v25, %v1748_v23  ;;  %v2111_v45 = vrot.slane %v1748_v23, %v3098_v29  ;;  %v1852_v33 = vmul.f32 %v2529_v46, %v1743_v30  ;;  %v2107_v47 = vrot.slane %v1743_v30, %v3101_v31  ;;  %v2533_v23 = vld [vmem:[%s3864_s0 + $0xf0] sm:$0xff]  ;;  %s2534_s0 = scalar_lea.vmem %s2230_s28, 256 }
 0x478   :  { %v1920_v42 = vrot.slane %v1919_v35, 4  ;;  %v1913_v16 = vrot.slane %v1912_v41, 2  ;;  %v1906_v51 = vrot.slane %v1905_v54, 1  ;;  %v1880_v36 = vadd.f32 %v1879_v21, %v3728_v2  ;;  %p2535_p0 = scmp.ne.s32.totalorder %s2230_s28, %s2534_s0  ;;  %p2540_p2 = scmp.lt.s32.totalorder %s2534_s0, %s2534_s0 }
 0x479   :  { %v1927_v34 = vsel %vm75_vm0, %v1853_v6, 0.0  ;;  %v1926_v61 = vsel %vm75_vm0, %v1852_v33, 0.0  ;;  %v2112_v18 = vsel %vm911_vm1, %v2111_v45, %v2107_v47  ;;  %v1898_v4 = vadd.f32 %v1897_v24, %v3768_v0 }
 0x47a   :  { %v1921_v37 = vadd.f32 %v1920_v42, %v1919_v35  ;;  %v1928_v12 = vadd.f32 %v1927_v34, %v1926_v61  ;;  %v1758_v52 = vpop.permute.xlu0 %1757  ;;  %v1753_v8 = vpop.permute.xlu1 %1752  ;;  %v1914_v58 = vadd.f32 %v1913_v16, %v1912_v41  ;;  %v2199_v44 = vsel %vm1058_vm8, %v2112_v18, %v2198_v9  ;;  %p2541_p3 = por %p2540_p2, %p2539_p1 }
 0x47b   :  { %v1855_v56 = vmul.f32 %v2530_v43, %v1758_v52  ;;  %v2120_v49 = vrot.slane %v1758_v52, %v3098_v29  ;;  %v1854_v1 = vmul.f32 %v2531_v27, %v1753_v8  ;;  %v2116_v50 = vrot.slane %v1753_v8, %v3101_v31 }
 0x47c   :  { %v1922_v7 = vrot.slane %v1921_v37, 2  ;;  %v1929_v62 = vrot.slane %v1928_v12, 4  ;;  %v1915_v46 = vrot.slane %v1914_v58, 1  ;;  %v1907_v61 = vadd.f32 %v1906_v51, %v1905_v54  ;;  %p2542_p4 = pnand %p2541_p3, %p2535_p0 }
 0x47d   :  { %v1936_v60 = vsel %vm75_vm0, %v1855_v56, 0.0  ;;  %v1935_v20 = vsel %vm75_vm0, %v1854_v1, 0.0  ;;  %v2121_v19 = vsel %vm911_vm1, %v2120_v49, %v2116_v50  ;;  %v1961_v52 = vadd.f32 %v1960_v5, %v3649_v40 }
 0x47e   :  { %v1923_v13 = vadd.f32 %v1922_v7, %v1921_v37  ;;  %v1930_v28 = vadd.f32 %v1929_v62, %v1928_v12  ;;  %v1937_v55 = vadd.f32 %v1936_v60, %v1935_v20  ;;  %v1838_v32 = vpop.permute.xlu0 %1837  ;;  %v1833_v14 = vpop.permute.xlu1 %1832  ;;  %v2200_v45 = vsel %vm1060_vm7, %v2121_v19, %v2199_v44 }
 0x47f   :  { %v1871_v41 = vmul.f32 %v2532_v59, %v1838_v32  ;;  %v2192_v35 = vrot.slane %v1838_v32, %v3098_v29  ;;  %v1870_v30 = vmul.f32 %v2533_v23, %v1833_v14  ;;  %2210 = vst.msk [vmem:[#allocation4] sm:$0xff] %vm1071_vm9, %v2200_v45  ;;  %v2188_v11 = vrot.slane %v1833_v14, %v3101_v31 }
 0x480   :  { %v1931_v25 = vrot.slane %v1930_v28, 2  ;;  %v1938_v6 = vrot.slane %v1937_v55, 4  ;;  %v1924_v42 = vrot.slane %v1923_v13, 1  ;;  %v1987_v8 = vrot.slane %v3706_v22, 1 }
 0x481   :  { %v2008_v33 = vsel %vm75_vm0, %v1871_v41, 0.0  ;;  %v2007_v29 = vsel %vm75_vm0, %v1870_v30, 0.0  ;;  %v2193_v47 = vsel %vm911_vm1, %v2192_v35, %v2188_v11  ;;  %v1996_v2 = vrot.slane %v3733_v57, 1 }
 0x482   :  { %v1932_v53 = vadd.f32 %v1931_v25, %v1930_v28  ;;  %v1939_v16 = vadd.f32 %v1938_v6, %v1937_v55  ;;  %v2009_v34 = vadd.f32 %v2008_v33, %v2007_v29  ;;  %v2207_v31 = vsel %vm1060_vm7, %v2193_v47, %v3724_v63 }
 0x483   :  { %v1916_v21 = vadd.f32 %v1915_v46, %v1914_v58  ;;  %2211 = vst.msk [vmem:[#allocation4 + $0x8] sm:$0xff] %vm1071_vm9, %v2207_v31  ;;  %v2032_v0 = vsel %vm1048_vm2, %v1889_v39, %v1880_v36  ;;  %v1925_v54 = vadd.f32 %v1924_v42, %v1923_v13 }
 0x484   :  { %v1933_v10 = vrot.slane %v1932_v53, 1  ;;  %v1940_v37 = vrot.slane %v1939_v16, 2  ;;  %v2010_v12 = vrot.slane %v2009_v34, 4 }
 0x486   :  { %v1941_v24 = vadd.f32 %v1940_v37, %v1939_v16  ;;  %v2011_v18 = vadd.f32 %v2010_v12, %v2009_v34 }
 0x487   :  { %2545 = shalt.err (!%p2542_p4)
}
 0x488   :  { %s2581_s29 = smov 128   ;;  %s2582_s30 = smov 8   ;;  %v1970_v40 = vadd.f32 %v1969_v38, %v3676_v48  ;;  %v2005_v5 = vrot.slane %v3735_v17, 1  ;;  %v2033_v63 = vsel %vm1050_vm3, %v1898_v4, %v2032_v0  ;;  %v1934_v43 = vadd.f32 %v1933_v10, %v1932_v53 }
 0x489   :  { %2235 = dma.vmem_to_hbm [thread:$0]  %s2230_s28, 256, %s3872_s8, [#allocation5], %s2581_s29, %s2581_s29, %s2582_s30   ;;  %v1979_v56 = vadd.f32 %v1978_v26, %v3680_v3  ;;  %v2034_v49 = vsel %vm1052_vm4, %v1907_v61, %v2033_v63  ;;  %v1942_v27 = vrot.slane %v1941_v24, 1  ;;  %v2012_v1 = vrot.slane %v2011_v18, 2 }
 0x48a   :  { %v2039_v51 = vsel %vm1048_vm2, %v1961_v52, %v3672_v15  ;;  %v1988_v7 = vadd.f32 %v1987_v8, %v3706_v22  ;;  %v2035_v48 = vsel %vm1054_vm5, %v1916_v21, %v2034_v49  ;;  %v1997_v38 = vadd.f32 %v1996_v2, %v3733_v57  ;;  %s2583_s8 = smov [#allocation2]  }
 0x48b   :  { %v1943_v9 = vadd.f32 %v1942_v27, %v1941_v24  ;;  %v2013_v62 = vadd.f32 %v2012_v1, %v2011_v18  ;;  %v2036_v58 = vsel %vm1056_vm6, %v1925_v54, %v2035_v48  ;;  %v2040_v60 = vsel %vm1050_vm3, %v1970_v40, %v2039_v51  ;;  %s2217_s4 = sshll.u32 %s2583_s8, 4  ;;  %s2218_s4 = int_to_ptr.vmem [resolvable:$true] %s2217_s4 }
 0x48c   :  { %v2006_v3 = vadd.f32 %v2005_v5, %v3735_v17  ;;  %v2037_v26 = vsel %vm1058_vm8, %v1934_v43, %v2036_v58  ;;  %v2041_v20 = vsel %vm1052_vm4, %v1979_v56, %v2040_v60  ;;  %s2554_s11 = scalar_lea.vmem %s2218_s4, 256  ;;  %p2559_p6 = scmp.lt.s32.totalorder %s2218_s4, %s2218_s4 }
 0x48d   :  { %v2014_v50 = vrot.slane %v2013_v62, 1  ;;  %v2038_v15 = vsel %vm1060_vm7, %v1943_v9, %v2037_v26  ;;  %v2042_v22 = vsel %vm1054_vm5, %v1988_v7, %v2041_v20  ;;  %p2555_p5 = scmp.ne.s32.totalorder %s2218_s4, %s2554_s11  ;;  %p2560_p7 = scmp.lt.s32.totalorder %s2554_s11, %s2554_s11 }
 0x48e   :  { %2048 = vst.msk [vmem:[#allocation2] sm:$0xff] %vm75_vm0, %v2038_v15  ;;  %v2043_v13 = vsel %vm1056_vm6, %v1997_v38, %v2042_v22 }
 0x48f   :  { %v2015_v57 = vadd.f32 %v2014_v50, %v2013_v62  ;;  %v2044_v28 = vsel %vm1058_vm8, %v2006_v3, %v2043_v13  ;;  %p2561_p8 = por %p2560_p7, %p2559_p6 }
 0x491   :  { %v2045_v17 = vsel %vm1060_vm7, %v2015_v57, %v2044_v28  ;;  %p2562_p9 = pnand %p2561_p8, %p2555_p5 }
 0x492   :  { %2049 = vst.msk [vmem:[#allocation2 + $0x8] sm:$0xff] %vm75_vm0, %v2045_v17 }
 0x493   :  { %2565 = shalt.err (!%p2562_p9)
}
 0x494   :  { %2223 = dma.vmem_to_hbm [thread:$0]  %s2218_s4, 256, %s3871_s7, [#allocation3], %s2581_s29, %s2581_s29, %s2582_s30  }
 0x495   :  { %2574 = dma.done.wait [#allocation3], 256  }
 0x496   :  { %2575 = vsyncadd [#allocation3], 4294967040 }
 0x497   :  { %2576 = dma.done.wait [#allocation5], 256  }
 0x498   :  { %2577 = vsyncadd [#allocation5], 4294967040 }
 0x499   :  { %2242 = vsyncpa [#allocation3], 1 }
 0x49a   :  { %2243 = vsyncpa [#allocation5], 1 }

</bundles_post_ra>
